<compile_context>
chip_gen: v6e
topology: v6e:2x2x1
jax: 0.10.0
libtpu: 0.0.40
codegen_flags: <defaults>
</compile_context>

<pallas_src>
import functools

import jax
import jax.numpy as jnp
from jax.experimental import pallas as pl
from jax.experimental.pallas import tpu as pltpu


def _posterior_encoder_kernel(
    lens_ref,                                    # scalar-prefetch (SMEM): (B,) int32
    x_ref, eps_ref,                              # (1, T, C) f32, (1, T, out) f32
    pre_w_ref, pre_b_ref,                        # (C, C) bf16, (1, C) f32
    in_wt_ref, in_ws_ref,                        # (L, K, C, C) bf16 (tanh / sigmoid halves)
    in_bt_ref, in_bs_ref,                        # (L, 1, C) f32 each
    rs_res_w_ref, rs_res_b_ref,                  # (L-1, C, C) bf16, (L-1, 1, C) f32
    rs_skip_w_ref, rs_skip_b_ref,                # (L, C, C) bf16, (L, 1, C) f32
    proj_m_w_ref, proj_m_b_ref,                  # (C, out) bf16, (1, out) f32
    proj_s_w_ref, proj_s_b_ref,                  # (C, out) bf16, (1, out) f32
    out_ref,                                     # (1, 3, T, out): [z | m | logs] on axis 1
    x_pad_ref,                                   # VMEM scratch (pad_left + T + pad_right, C) f32
    *, hidden, out_ch, kernel_size, dilation_rate, n_layers, pad_left, pad_right,
):
    b = pl.program_id(0)
    T = x_ref.shape[1]
    C = hidden

    length = lens_ref[b]
    t_idx = jax.lax.broadcasted_iota(jnp.int32, (T, 1), 0)
    mask = (t_idx < length).astype(jnp.float32)              # (T, 1)
    # Hoisted broadcasts (JAX does not CSE broadcast_in_dim).
    mask_c = jnp.broadcast_to(mask, (T, C))
    mask_o = jnp.broadcast_to(mask, (T, out_ch))

    # pre: 1x1 conv == channel matmul (bf16 MXU, f32 accumulation), then mask
    x = (jnp.dot(x_ref[0].astype(jnp.bfloat16), pre_w_ref[...],
                 preferred_element_type=jnp.float32)
         + pre_b_ref[...]) * mask_c                          # (T, C) f32

    # Padded staging buffer: zero only the halo rows (per grid step — must NOT
    # be gated on program_id, so megacore sharding of the batch axis stays
    # correct); the T valid rows are fully overwritten right after.
    if pad_left > 0:
        x_pad_ref[pl.ds(0, pad_left), :] = jnp.zeros((pad_left, C), jnp.float32)
    if pad_right > 0:
        x_pad_ref[pl.ds(pad_left + T, pad_right), :] = (
            jnp.zeros((pad_right, C), jnp.float32))
    x_pad_ref[pl.ds(pad_left, T), :] = x

    # WN (gin_channels = 0 -> no conditioning; p_dropout = 0 -> identity)
    output = jnp.zeros((T, C), jnp.float32)
    # TODO(synk): at production sizes (n_layers=16, long T) move the layer loop
    # onto an innermost "arbitrary" grid axis (or lax.fori_loop with an SMEM
    # tap-offset table) so only ~2 layers of weights are resident, and add a
    # time-tile grid axis with a receptive-field halo.
    for i in range(n_layers):
        dil = dilation_rate ** i
        pad = ((kernel_size - 1) * dil) // 2
        xt = jnp.broadcast_to(in_bt_ref[i], (T, C))          # start from bias (f32)
        xs = jnp.broadcast_to(in_bs_ref[i], (T, C))
        # K accumulating dots on shifted views of the padded staging buffer
        # (no lane concat; f32 accumulation, in-place in the MRB on v7x).
        for k in range(kernel_size):
            tap = x_pad_ref[pl.ds(pad_left + k * dil - pad, T), :].astype(jnp.bfloat16)
            xt = xt + jnp.dot(tap, in_wt_ref[i, k], preferred_element_type=jnp.float32)
            xs = xs + jnp.dot(tap, in_ws_ref[i, k], preferred_element_type=jnp.float32)
        # fused_add_tanh_sigmoid_multiply (g = 0); sigmoid via tanh -> 1 EUP push
        acts = jnp.tanh(xt) * (0.5 * (jnp.tanh(0.5 * xs) + 1.0))
        acts_bf = acts.astype(jnp.bfloat16)

        output = (output
                  + jnp.dot(acts_bf, rs_skip_w_ref[i],
                            preferred_element_type=jnp.float32)
                  + rs_skip_b_ref[i])
        if i < n_layers - 1:
            res = (jnp.dot(acts_bf, rs_res_w_ref[i],
                           preferred_element_type=jnp.float32)
                   + rs_res_b_ref[i])
            x = (x + res) * mask_c
            x_pad_ref[pl.ds(pad_left, T), :] = x             # restage for next layer

    h_bf = (output * mask_c).astype(jnp.bfloat16)

    # proj: 1x1 conv (m / logs halves pre-split in the wrapper), mask, reparameterize
    m = (jnp.dot(h_bf, proj_m_w_ref[...], preferred_element_type=jnp.float32)
         + proj_m_b_ref[...]) * mask_o
    logs = (jnp.dot(h_bf, proj_s_w_ref[...], preferred_element_type=jnp.float32)
            + proj_s_b_ref[...]) * mask_o
    z = (m + eps_ref[0] * jnp.exp(logs)) * mask_o

    # Three lane-dense stores (no lane concatenation of z|m|logs).
    out_ref[0, 0] = z
    out_ref[0, 1] = m
    out_ref[0, 2] = logs


def _vmem_limit_bytes():
    """Generation-aware VMEM limit: headroom on v7x (64 MiB/TC), use more of
    v5e/v6e's 128 MiB."""
    try:
        cap = pltpu.get_tpu_info().vmem_capacity_bytes
    except Exception:
        cap = 64 * 1024 * 1024
    return max(32 * 1024 * 1024, int(cap * 0.85))


def posterior_encoder_forward(x_nct, x_lengths, eps_nct, params, *,
                              out_channels, hidden_channels, kernel_size,
                              dilation_rate, n_layers):
    B, C, T = x_nct.shape
    assert C == hidden_channels
    L, K = n_layers, kernel_size
    bf16 = jnp.bfloat16

    x_btc = jnp.transpose(x_nct, (0, 2, 1)).astype(jnp.float32)
    eps_btc = jnp.transpose(eps_nct, (0, 2, 1)).astype(jnp.float32)
    lens = x_lengths.astype(jnp.int32)

    # Static halo sizes over all layers for the padded staging scratch.
    pads = [((K - 1) * dilation_rate ** i) // 2 for i in range(L)]
    pad_left = max(pads)
    pad_right = max((K - 1) * dilation_rate ** i - p for i, p in enumerate(pads))

    # --- weight preprocessing (wrapper side, once) -------------------------
    # bf16 weights (fp32 accumulation in-kernel); biases stay fp32; gate halves
    # pre-split so the kernel never slices at a non-lane-aligned channel
    # offset; unused last-layer residual weights dropped.
    in_w = params["in_w"]                                        # (L, K, C, 2C)
    in_wt = in_w[..., :hidden_channels].astype(bf16)             # (L, K, C, C)
    in_ws = in_w[..., hidden_channels:].astype(bf16)
    in_bt = params["in_b"][:, :, :hidden_channels]
    in_bs = params["in_b"][:, :, hidden_channels:]
    rs_w, rs_b = params["rs_w"], params["rs_b"]
    n_res = max(L - 1, 1)
    rs_res_w = rs_w[:n_res, :, :hidden_channels].astype(bf16)
    rs_res_b = rs_b[:n_res, :, :hidden_channels]
    # skip half: second half for layers < L-1, first half for the last layer
    rs_skip_w = jnp.concatenate(
        [rs_w[:-1, :, hidden_channels:], rs_w[-1:, :, :hidden_channels]],
        axis=0).astype(bf16)
    rs_skip_b = jnp.concatenate(
        [rs_b[:-1, :, hidden_channels:], rs_b[-1:, :, :hidden_channels]], axis=0)
    proj_m_w = params["proj_w"][:, :out_channels].astype(bf16)
    proj_s_w = params["proj_w"][:, out_channels:].astype(bf16)
    proj_m_b = params["proj_b"][:, :out_channels]
    proj_s_b = params["proj_b"][:, out_channels:]
    pre_w = params["pre_w"].astype(bf16)
    pre_b = params["pre_b"]

    weight_args = (pre_w, pre_b,
                   in_wt, in_ws, in_bt, in_bs,
                   rs_res_w, rs_res_b, rs_skip_w, rs_skip_b,
                   proj_m_w, proj_m_b, proj_s_w, proj_s_b)

    kernel = functools.partial(
        _posterior_encoder_kernel,
        hidden=hidden_channels, out_ch=out_channels,
        kernel_size=kernel_size, dilation_rate=dilation_rate,
        n_layers=n_layers, pad_left=pad_left, pad_right=pad_right)

    out_shape = jax.ShapeDtypeStruct((B, 3, T, out_channels), jnp.float32)

    def build_call(single_buffer_weights):
        # Weights: full-array blocks with constant index maps -> DMA'd once and
        # resident across the batch grid; Buffered(1) drops the default second
        # buffer (halves resident-weight VMEM — matters on v7x at real sizes).
        def weight_spec(arr):
            nd = arr.ndim
            idx = lambda b, lens, _nd=nd: (0,) * _nd
            if single_buffer_weights:
                return pl.BlockSpec(arr.shape, idx, pipeline_mode=pl.Buffered(1))
            return pl.BlockSpec(arr.shape, idx)

        in_specs = [
            pl.BlockSpec((1, T, hidden_channels), lambda b, lens: (b, 0, 0)),
            pl.BlockSpec((1, T, out_channels), lambda b, lens: (b, 0, 0)),
        ] + [weight_spec(w) for w in weight_args]
        out_specs = pl.BlockSpec((1, 3, T, out_channels),
                                 lambda b, lens: (b, 0, 0, 0))

        return pl.pallas_call(
            kernel,
            out_shape=out_shape,
            grid_spec=pltpu.PrefetchScalarGridSpec(
                num_scalar_prefetch=1, grid=(B,),
                in_specs=in_specs, out_specs=out_specs,
                scratch_shapes=[pltpu.VMEM(
                    (pad_left + T + pad_right, hidden_channels), jnp.float32)]),
            compiler_params=pltpu.CompilerParams(
                dimension_semantics=("parallel",),
                vmem_limit_bytes=_vmem_limit_bytes()),
        )

    # TODO(synk): for tiny-T workloads like the toy config fold the batch into
    # the sublane axis (one grid step over (B*T, C) with zeroed inter-batch
    # halos); on v7x verify the batch axis actually shards across both
    # TensorCores (pltpu.CORE_PARALLEL) if xprof shows one core idle.
    try:
        packed = build_call(True)(lens, x_btc, eps_btc, *weight_args)
    except Exception:
        # pipeline_mode=Buffered(1) unsupported on this jax version -> default.
        packed = build_call(False)(lens, x_btc, eps_btc, *weight_args)

    tr = lambda a: jnp.transpose(a, (0, 2, 1))
    z = tr(packed[:, 0])
    m = tr(packed[:, 1])
    logs = tr(packed[:, 2])
    # x_mask depends only on x_lengths -> cheap plain-JAX op, no narrow TPU store.
    t = jnp.arange(T)[None, None, :]
    x_mask = (t < x_lengths[:, None, None]).astype(jnp.float32)   # (B, 1, T)
    return z, m, logs, x_mask


def _reference_forward(x_nct, x_lengths, eps_nct, params, *, out_channels,
                       hidden_channels, kernel_size, dilation_rate, n_layers):
    """Plain-JAX fp32 reference (same math, (B,T,C) layout) to validate the kernel."""
    B, C, T = x_nct.shape
    x = jnp.transpose(x_nct, (0, 2, 1)).astype(jnp.float32)
    eps = jnp.transpose(eps_nct, (0, 2, 1)).astype(jnp.float32)
    t = jnp.arange(T)[None, :, None]
    mask = (t < x_lengths[:, None, None]).astype(jnp.float32)   # (B, T, 1)

    def shift(a, off):
        if off == 0:
            return a
        z = jnp.zeros((B, abs(off), C), a.dtype)
        if off > 0:
            return jnp.concatenate([a[:, off:, :], z], axis=1)
        return jnp.concatenate([z, a[:, : T + off, :]], axis=1)

    x = (jnp.einsum("btc,cd->btd", x, params["pre_w"]) + params["pre_b"]) * mask
    output = jnp.zeros((B, T, C), jnp.float32)
    for i in range(n_layers):
        dil = dilation_rate ** i
        pad = (kernel_size * dil - dil) // 2
        x_in = jnp.zeros((B, T, 2 * C), jnp.float32)
        for k in range(kernel_size):
            x_in = x_in + jnp.einsum("btc,cd->btd",
                                     shift(x, k * dil - pad),
                                     params["in_w"][i, k])
        x_in = x_in + params["in_b"][i]
        acts = jnp.tanh(x_in[..., :C]) * jax.nn.sigmoid(x_in[..., C:])
        rs = jnp.einsum("btc,cd->btd", acts, params["rs_w"][i]) + params["rs_b"][i]
        if i < n_layers - 1:
            x = (x + rs[..., :C]) * mask
            output = output + rs[..., C:]
        else:
            output = output + rs[..., :C]
    x = output * mask
    stats = (jnp.einsum("btc,cd->btd", x, params["proj_w"]) + params["proj_b"]) * mask
    m = stats[..., :out_channels]
    logs = stats[..., out_channels:]
    z = (m + eps * jnp.exp(logs)) * mask
    tr = lambda a: jnp.transpose(a, (0, 2, 1))
    return tr(z), tr(m), tr(logs), tr(mask)


if __name__ == "__main__":
    # hyperparameters implied by the module __init__
    out_channels, hidden, kernel_size, dilation_rate, n_layers = 4, 32, 3, 2, 2
    B, T = 2, 16

    key = jax.random.PRNGKey(0)
    ks = jax.random.split(key, 12)
    s = 0.1
    params = {
        "pre_w":  s * jax.random.normal(ks[0], (hidden, hidden), jnp.float32),
        "pre_b":  s * jax.random.normal(ks[1], (1, hidden), jnp.float32),
        "in_w":   s * jax.random.normal(ks[2], (n_layers, kernel_size, hidden, 2 * hidden), jnp.float32),
        "in_b":   s * jax.random.normal(ks[3], (n_layers, 1, 2 * hidden), jnp.float32),
        "rs_w":   s * jax.random.normal(ks[4], (n_layers, hidden, 2 * hidden), jnp.float32),
        "rs_b":   s * jax.random.normal(ks[5], (n_layers, 1, 2 * hidden), jnp.float32),
        "proj_w": s * jax.random.normal(ks[6], (hidden, 2 * out_channels), jnp.float32),
        "proj_b": s * jax.random.normal(ks[7], (1, 2 * out_channels), jnp.float32),
    }
    x = jax.random.normal(ks[8], (B, hidden, T), jnp.float32)          # NCT
    x_lengths = jnp.array([16, 11], jnp.int32)
    eps = jax.random.normal(ks[9], (B, out_channels, T), jnp.float32)  # torch.randn_like(m)

    hp = dict(out_channels=out_channels, hidden_channels=hidden,
              kernel_size=kernel_size, dilation_rate=dilation_rate,
              n_layers=n_layers)

    z, m, logs, x_mask = posterior_encoder_forward(x, x_lengths, eps, params, **hp)
    jax.block_until_ready((z, m, logs, x_mask))

    z_r, m_r, logs_r, mask_r = _reference_forward(x, x_lengths, eps, params, **hp)
    assert z.shape == (B, out_channels, T) and x_mask.shape == (B, 1, T)
    # bf16-weight MXU path vs fp32 reference -> relaxed tolerance.
    for a, b_ in ((z, z_r), (m, m_r), (logs, logs_r), (x_mask, mask_r)):
        assert jnp.allclose(a, b_, atol=3e-2, rtol=3e-2)

    print("KERNEL_OK")
</pallas_src>

<mosaic_0001>
module attributes {stable_mosaic.version = 11 : i64} {
  func.func @_posterior_encoder_kernel(%arg0: i32, %arg1: memref<2xi32, #tpu.memory_space<smem>>, %arg2: memref<1x16x32xf32, #tpu.memory_space<vmem>>, %arg3: memref<1x16x4xf32, #tpu.memory_space<vmem>>, %arg4: memref<32x32xbf16, #tpu.memory_space<vmem>>, %arg5: memref<1x32xf32, #tpu.memory_space<vmem>>, %arg6: memref<2x3x32x32xbf16, #tpu.memory_space<vmem>>, %arg7: memref<2x3x32x32xbf16, #tpu.memory_space<vmem>>, %arg8: memref<2x1x32xf32, #tpu.memory_space<vmem>>, %arg9: memref<2x1x32xf32, #tpu.memory_space<vmem>>, %arg10: memref<1x32x32xbf16, #tpu.memory_space<vmem>>, %arg11: memref<1x1x32xf32, #tpu.memory_space<vmem>>, %arg12: memref<2x32x32xbf16, #tpu.memory_space<vmem>>, %arg13: memref<2x1x32xf32, #tpu.memory_space<vmem>>, %arg14: memref<32x4xbf16, #tpu.memory_space<vmem>>, %arg15: memref<1x4xf32, #tpu.memory_space<vmem>>, %arg16: memref<32x4xbf16, #tpu.memory_space<vmem>>, %arg17: memref<1x4xf32, #tpu.memory_space<vmem>>, %arg18: memref<1x3x16x4xf32, #tpu.memory_space<vmem>>, %arg19: memref<20x32xf32, #tpu.memory_space<vmem>>) attributes {dimension_semantics = [#tpu.dimension_semantics<parallel>], iteration_bounds = array<i64: 2>, scalar_prefetch = 1 : i64, scratch_operands = 1 : i64, tpu.core_type = #tpu.core_type<tc>, window_params = [{transform_indices = @transform_0, window_bounds = array<i64: 1, 16, 32>}, {transform_indices = @transform_1, window_bounds = array<i64: 1, 16, 4>}, {pipeline_mode = #tpu.pipeline_mode<synchronous>, transform_indices = @transform_2, window_bounds = array<i64: 32, 32>}, {pipeline_mode = #tpu.pipeline_mode<synchronous>, transform_indices = @transform_3, window_bounds = array<i64: 1, 32>}, {pipeline_mode = #tpu.pipeline_mode<synchronous>, transform_indices = @transform_4, window_bounds = array<i64: 2, 3, 32, 32>}, {pipeline_mode = #tpu.pipeline_mode<synchronous>, transform_indices = @transform_5, window_bounds = array<i64: 2, 3, 32, 32>}, {pipeline_mode = #tpu.pipeline_mode<synchronous>, transform_indices = @transform_6, window_bounds = array<i64: 2, 1, 32>}, {pipeline_mode = #tpu.pipeline_mode<synchronous>, transform_indices = @transform_7, window_bounds = array<i64: 2, 1, 32>}, {pipeline_mode = #tpu.pipeline_mode<synchronous>, transform_indices = @transform_8, window_bounds = array<i64: 1, 32, 32>}, {pipeline_mode = #tpu.pipeline_mode<synchronous>, transform_indices = @transform_9, window_bounds = array<i64: 1, 1, 32>}, {pipeline_mode = #tpu.pipeline_mode<synchronous>, transform_indices = @transform_10, window_bounds = array<i64: 2, 32, 32>}, {pipeline_mode = #tpu.pipeline_mode<synchronous>, transform_indices = @transform_11, window_bounds = array<i64: 2, 1, 32>}, {pipeline_mode = #tpu.pipeline_mode<synchronous>, transform_indices = @transform_12, window_bounds = array<i64: 32, 4>}, {pipeline_mode = #tpu.pipeline_mode<synchronous>, transform_indices = @transform_13, window_bounds = array<i64: 1, 4>}, {pipeline_mode = #tpu.pipeline_mode<synchronous>, transform_indices = @transform_14, window_bounds = array<i64: 32, 4>}, {pipeline_mode = #tpu.pipeline_mode<synchronous>, transform_indices = @transform_15, window_bounds = array<i64: 1, 4>}, {transform_indices = @transform_16, window_bounds = array<i64: 1, 3, 16, 4>}]} {
    %0 = arith.index_cast %arg0 : i32 to index
    %1 = memref.load %arg1[%0] : memref<2xi32, #tpu.memory_space<smem>>
    %2 = tpu.iota {dimensions = array<i32: 0>} : vector<16x1xi32>
    %3 = vector.broadcast %1 : i32 to vector<16x1xi32>
    %4 = arith.cmpi slt, %2, %3 : vector<16x1xi32>
    %5 = arith.extui %4 : vector<16x1xi1> to vector<16x1xi32>
    %6 = arith.sitofp %5 : vector<16x1xi32> to vector<16x1xf32>
    %7 = vector.shape_cast %6 : vector<16x1xf32> to vector<16x1xf32>
    %8 = vector.broadcast %7 : vector<16x1xf32> to vector<16x32xf32>
    %9 = vector.shape_cast %6 : vector<16x1xf32> to vector<16x1xf32>
    %10 = vector.broadcast %9 : vector<16x1xf32> to vector<16x4xf32>
    %c0 = arith.constant 0 : index
    %c0_0 = arith.constant 0 : index
    %c0_1 = arith.constant 0 : index
    %11 = vector.load %arg2[%c0, %c0_0, %c0_1] : memref<1x16x32xf32, #tpu.memory_space<vmem>>, vector<1x16x32xf32>
    %12 = vector.shape_cast %11 : vector<1x16x32xf32> to vector<16x32xf32>
    %13 = arith.truncf %12 : vector<16x32xf32> to vector<16x32xbf16>
    %c0_2 = arith.constant 0 : index
    %c0_3 = arith.constant 0 : index
    %14 = vector.load %arg4[%c0_2, %c0_3] : memref<32x32xbf16, #tpu.memory_space<vmem>>, vector<32x32xbf16>
    %cst = arith.constant dense<0.000000e+00> : vector<16x32xf32>
    %15 = tpu.matmul %13, %14, %cst {dimension_numbers = #tpu.dot_dimension_numbers<[1], [0], [0], [1], [0, 0, 1, 1], [], []>} : vector<16x32xbf16>, vector<32x32xbf16>, vector<16x32xf32> -> vector<16x32xf32>
    %c0_4 = arith.constant 0 : index
    %c0_5 = arith.constant 0 : index
    %16 = vector.load %arg5[%c0_4, %c0_5] : memref<1x32xf32, #tpu.memory_space<vmem>>, vector<1x32xf32>
    %17 = vector.broadcast %16 : vector<1x32xf32> to vector<16x32xf32>
    %18 = arith.addf %15, %17 : vector<16x32xf32>
    %19 = arith.mulf %18, %8 : vector<16x32xf32>
    %cst_6 = arith.constant 0.000000e+00 : f32
    %20 = vector.broadcast %cst_6 : f32 to vector<2x32xf32>
    %c0_7 = arith.constant 0 : index
    %c0_8 = arith.constant 0 : index
    %21 = vector.load %arg19[%c0_7, %c0_8] : memref<20x32xf32, #tpu.memory_space<vmem>>, vector<2x32xf32>
    tpu.vector_store %arg19[%c0_7, %c0_8], %20 {strides = array<i32>} : memref<20x32xf32, #tpu.memory_space<vmem>>, vector<2x32xf32>,
    %cst_9 = arith.constant 0.000000e+00 : f32
    %22 = vector.broadcast %cst_9 : f32 to vector<2x32xf32>
    %c18 = arith.constant 18 : index
    %c0_10 = arith.constant 0 : index
    %23 = vector.load %arg19[%c18, %c0_10] : memref<20x32xf32, #tpu.memory_space<vmem>>, vector<2x32xf32>
    tpu.vector_store %arg19[%c18, %c0_10], %22 {strides = array<i32>} : memref<20x32xf32, #tpu.memory_space<vmem>>, vector<2x32xf32>,
    %c2 = arith.constant 2 : index
    %c0_11 = arith.constant 0 : index
    %24 = vector.load %arg19[%c2, %c0_11] : memref<20x32xf32, #tpu.memory_space<vmem>>, vector<16x32xf32>
    tpu.vector_store %arg19[%c2, %c0_11], %19 {strides = array<i32>} : memref<20x32xf32, #tpu.memory_space<vmem>>, vector<16x32xf32>,
    %cst_12 = arith.constant 0.000000e+00 : f32
    %25 = vector.broadcast %cst_12 : f32 to vector<16x32xf32>
    %c0_13 = arith.constant 0 : index
    %c0_14 = arith.constant 0 : index
    %c0_15 = arith.constant 0 : index
    %26 = vector.load %arg8[%c0_13, %c0_14, %c0_15] : memref<2x1x32xf32, #tpu.memory_space<vmem>>, vector<1x1x32xf32>
    %27 = vector.shape_cast %26 : vector<1x1x32xf32> to vector<1x32xf32>
    %28 = vector.shape_cast %27 : vector<1x32xf32> to vector<1x32xf32>
    %29 = vector.broadcast %28 : vector<1x32xf32> to vector<16x32xf32>
    %c0_16 = arith.constant 0 : index
    %c0_17 = arith.constant 0 : index
    %c0_18 = arith.constant 0 : index
    %30 = vector.load %arg9[%c0_16, %c0_17, %c0_18] : memref<2x1x32xf32, #tpu.memory_space<vmem>>, vector<1x1x32xf32>
    %31 = vector.shape_cast %30 : vector<1x1x32xf32> to vector<1x32xf32>
    %32 = vector.shape_cast %31 : vector<1x32xf32> to vector<1x32xf32>
    %33 = vector.broadcast %32 : vector<1x32xf32> to vector<16x32xf32>
    %c1 = arith.constant 1 : index
    %c0_19 = arith.constant 0 : index
    %34 = vector.load %arg19[%c1, %c0_19] : memref<20x32xf32, #tpu.memory_space<vmem>>, vector<16x32xf32>
    %35 = arith.truncf %34 : vector<16x32xf32> to vector<16x32xbf16>
    %c0_20 = arith.constant 0 : index
    %c0_21 = arith.constant 0 : index
    %c0_22 = arith.constant 0 : index
    %c0_23 = arith.constant 0 : index
    %36 = vector.load %arg6[%c0_20, %c0_21, %c0_22, %c0_23] : memref<2x3x32x32xbf16, #tpu.memory_space<vmem>>, vector<1x1x32x32xbf16>
    %37 = vector.shape_cast %36 : vector<1x1x32x32xbf16> to vector<32x32xbf16>
    %cst_24 = arith.constant dense<0.000000e+00> : vector<16x32xf32>
    %38 = tpu.matmul %35, %37, %cst_24 {dimension_numbers = #tpu.dot_dimension_numbers<[1], [0], [0], [1], [0, 0, 1, 1], [], []>} : vector<16x32xbf16>, vector<32x32xbf16>, vector<16x32xf32> -> vector<16x32xf32>
    %39 = arith.addf %29, %38 : vector<16x32xf32>
    %c0_25 = arith.constant 0 : index
    %c0_26 = arith.constant 0 : index
    %c0_27 = arith.constant 0 : index
    %c0_28 = arith.constant 0 : index
    %40 = vector.load %arg7[%c0_25, %c0_26, %c0_27, %c0_28] : memref<2x3x32x32xbf16, #tpu.memory_space<vmem>>, vector<1x1x32x32xbf16>
    %41 = vector.shape_cast %40 : vector<1x1x32x32xbf16> to vector<32x32xbf16>
    %cst_29 = arith.constant dense<0.000000e+00> : vector<16x32xf32>
    %42 = tpu.matmul %35, %41, %cst_29 {dimension_numbers = #tpu.dot_dimension_numbers<[1], [0], [0], [1], [0, 0, 1, 1], [], []>} : vector<16x32xbf16>, vector<32x32xbf16>, vector<16x32xf32> -> vector<16x32xf32>
    %43 = arith.addf %33, %42 : vector<16x32xf32>
    %c2_30 = arith.constant 2 : index
    %c0_31 = arith.constant 0 : index
    %44 = vector.load %arg19[%c2_30, %c0_31] : memref<20x32xf32, #tpu.memory_space<vmem>>, vector<16x32xf32>
    %45 = arith.truncf %44 : vector<16x32xf32> to vector<16x32xbf16>
    %c0_32 = arith.constant 0 : index
    %c1_33 = arith.constant 1 : index
    %c0_34 = arith.constant 0 : index
    %c0_35 = arith.constant 0 : index
    %46 = vector.load %arg6[%c0_32, %c1_33, %c0_34, %c0_35] : memref<2x3x32x32xbf16, #tpu.memory_space<vmem>>, vector<1x1x32x32xbf16>
    %47 = vector.shape_cast %46 : vector<1x1x32x32xbf16> to vector<32x32xbf16>
    %cst_36 = arith.constant dense<0.000000e+00> : vector<16x32xf32>
    %48 = tpu.matmul %45, %47, %cst_36 {dimension_numbers = #tpu.dot_dimension_numbers<[1], [0], [0], [1], [0, 0, 1, 1], [], []>} : vector<16x32xbf16>, vector<32x32xbf16>, vector<16x32xf32> -> vector<16x32xf32>
    %49 = arith.addf %39, %48 : vector<16x32xf32>
    %c0_37 = arith.constant 0 : index
    %c1_38 = arith.constant 1 : index
    %c0_39 = arith.constant 0 : index
    %c0_40 = arith.constant 0 : index
    %50 = vector.load %arg7[%c0_37, %c1_38, %c0_39, %c0_40] : memref<2x3x32x32xbf16, #tpu.memory_space<vmem>>, vector<1x1x32x32xbf16>
    %51 = vector.shape_cast %50 : vector<1x1x32x32xbf16> to vector<32x32xbf16>
    %cst_41 = arith.constant dense<0.000000e+00> : vector<16x32xf32>
    %52 = tpu.matmul %45, %51, %cst_41 {dimension_numbers = #tpu.dot_dimension_numbers<[1], [0], [0], [1], [0, 0, 1, 1], [], []>} : vector<16x32xbf16>, vector<32x32xbf16>, vector<16x32xf32> -> vector<16x32xf32>
    %53 = arith.addf %43, %52 : vector<16x32xf32>
    %c3 = arith.constant 3 : index
    %c0_42 = arith.constant 0 : index
    %54 = vector.load %arg19[%c3, %c0_42] : memref<20x32xf32, #tpu.memory_space<vmem>>, vector<16x32xf32>
    %55 = arith.truncf %54 : vector<16x32xf32> to vector<16x32xbf16>
    %c0_43 = arith.constant 0 : index
    %c2_44 = arith.constant 2 : index
    %c0_45 = arith.constant 0 : index
    %c0_46 = arith.constant 0 : index
    %56 = vector.load %arg6[%c0_43, %c2_44, %c0_45, %c0_46] : memref<2x3x32x32xbf16, #tpu.memory_space<vmem>>, vector<1x1x32x32xbf16>
    %57 = vector.shape_cast %56 : vector<1x1x32x32xbf16> to vector<32x32xbf16>
    %cst_47 = arith.constant dense<0.000000e+00> : vector<16x32xf32>
    %58 = tpu.matmul %55, %57, %cst_47 {dimension_numbers = #tpu.dot_dimension_numbers<[1], [0], [0], [1], [0, 0, 1, 1], [], []>} : vector<16x32xbf16>, vector<32x32xbf16>, vector<16x32xf32> -> vector<16x32xf32>
    %59 = arith.addf %49, %58 : vector<16x32xf32>
    %c0_48 = arith.constant 0 : index
    %c2_49 = arith.constant 2 : index
    %c0_50 = arith.constant 0 : index
    %c0_51 = arith.constant 0 : index
    %60 = vector.load %arg7[%c0_48, %c2_49, %c0_50, %c0_51] : memref<2x3x32x32xbf16, #tpu.memory_space<vmem>>, vector<1x1x32x32xbf16>
    %61 = vector.shape_cast %60 : vector<1x1x32x32xbf16> to vector<32x32xbf16>
    %cst_52 = arith.constant dense<0.000000e+00> : vector<16x32xf32>
    %62 = tpu.matmul %55, %61, %cst_52 {dimension_numbers = #tpu.dot_dimension_numbers<[1], [0], [0], [1], [0, 0, 1, 1], [], []>} : vector<16x32xbf16>, vector<32x32xbf16>, vector<16x32xf32> -> vector<16x32xf32>
    %63 = arith.addf %53, %62 : vector<16x32xf32>
    %64 = math.tanh %59 : vector<16x32xf32>
    %cst_53 = arith.constant 5.000000e-01 : f32
    %65 = vector.broadcast %cst_53 : f32 to vector<16x32xf32>
    %66 = arith.mulf %65, %63 : vector<16x32xf32>
    %67 = math.tanh %66 : vector<16x32xf32>
    %cst_54 = arith.constant 1.000000e+00 : f32
    %68 = vector.broadcast %cst_54 : f32 to vector<16x32xf32>
    %69 = arith.addf %67, %68 : vector<16x32xf32>
    %cst_55 = arith.constant 5.000000e-01 : f32
    %70 = vector.broadcast %cst_55 : f32 to vector<16x32xf32>
    %71 = arith.mulf %70, %69 : vector<16x32xf32>
    %72 = arith.mulf %64, %71 : vector<16x32xf32>
    %73 = arith.truncf %72 : vector<16x32xf32> to vector<16x32xbf16>
    %c0_56 = arith.constant 0 : index
    %c0_57 = arith.constant 0 : index
    %c0_58 = arith.constant 0 : index
    %74 = vector.load %arg12[%c0_56, %c0_57, %c0_58] : memref<2x32x32xbf16, #tpu.memory_space<vmem>>, vector<1x32x32xbf16>
    %75 = vector.shape_cast %74 : vector<1x32x32xbf16> to vector<32x32xbf16>
    %cst_59 = arith.constant dense<0.000000e+00> : vector<16x32xf32>
    %76 = tpu.matmul %73, %75, %cst_59 {dimension_numbers = #tpu.dot_dimension_numbers<[1], [0], [0], [1], [0, 0, 1, 1], [], []>} : vector<16x32xbf16>, vector<32x32xbf16>, vector<16x32xf32> -> vector<16x32xf32>
    %77 = arith.addf %25, %76 : vector<16x32xf32>
    %c0_60 = arith.constant 0 : index
    %c0_61 = arith.constant 0 : index
    %c0_62 = arith.constant 0 : index
    %78 = vector.load %arg13[%c0_60, %c0_61, %c0_62] : memref<2x1x32xf32, #tpu.memory_space<vmem>>, vector<1x1x32xf32>
    %79 = vector.shape_cast %78 : vector<1x1x32xf32> to vector<1x32xf32>
    %80 = vector.broadcast %79 : vector<1x32xf32> to vector<16x32xf32>
    %81 = arith.addf %77, %80 : vector<16x32xf32>
    %c0_63 = arith.constant 0 : index
    %c0_64 = arith.constant 0 : index
    %c0_65 = arith.constant 0 : index
    %82 = vector.load %arg10[%c0_63, %c0_64, %c0_65] : memref<1x32x32xbf16, #tpu.memory_space<vmem>>, vector<1x32x32xbf16>
    %83 = vector.shape_cast %82 : vector<1x32x32xbf16> to vector<32x32xbf16>
    %cst_66 = arith.constant dense<0.000000e+00> : vector<16x32xf32>
    %84 = tpu.matmul %73, %83, %cst_66 {dimension_numbers = #tpu.dot_dimension_numbers<[1], [0], [0], [1], [0, 0, 1, 1], [], []>} : vector<16x32xbf16>, vector<32x32xbf16>, vector<16x32xf32> -> vector<16x32xf32>
    %c0_67 = arith.constant 0 : index
    %c0_68 = arith.constant 0 : index
    %c0_69 = arith.constant 0 : index
    %85 = vector.load %arg11[%c0_67, %c0_68, %c0_69] : memref<1x1x32xf32, #tpu.memory_space<vmem>>, vector<1x1x32xf32>
    %86 = vector.shape_cast %85 : vector<1x1x32xf32> to vector<1x32xf32>
    %87 = vector.broadcast %86 : vector<1x32xf32> to vector<16x32xf32>
    %88 = arith.addf %84, %87 : vector<16x32xf32>
    %89 = arith.addf %19, %88 : vector<16x32xf32>
    %90 = arith.mulf %89, %8 : vector<16x32xf32>
    %c2_70 = arith.constant 2 : index
    %c0_71 = arith.constant 0 : index
    %91 = vector.load %arg19[%c2_70, %c0_71] : memref<20x32xf32, #tpu.memory_space<vmem>>, vector<16x32xf32>
    tpu.vector_store %arg19[%c2_70, %c0_71], %90 {strides = array<i32>} : memref<20x32xf32, #tpu.memory_space<vmem>>, vector<16x32xf32>,
    %c1_72 = arith.constant 1 : index
    %c0_73 = arith.constant 0 : index
    %c0_74 = arith.constant 0 : index
    %92 = vector.load %arg8[%c1_72, %c0_73, %c0_74] : memref<2x1x32xf32, #tpu.memory_space<vmem>>, vector<1x1x32xf32>
    %93 = vector.shape_cast %92 : vector<1x1x32xf32> to vector<1x32xf32>
    %94 = vector.shape_cast %93 : vector<1x32xf32> to vector<1x32xf32>
    %95 = vector.broadcast %94 : vector<1x32xf32> to vector<16x32xf32>
    %c1_75 = arith.constant 1 : index
    %c0_76 = arith.constant 0 : index
    %c0_77 = arith.constant 0 : index
    %96 = vector.load %arg9[%c1_75, %c0_76, %c0_77] : memref<2x1x32xf32, #tpu.memory_space<vmem>>, vector<1x1x32xf32>
    %97 = vector.shape_cast %96 : vector<1x1x32xf32> to vector<1x32xf32>
    %98 = vector.shape_cast %97 : vector<1x32xf32> to vector<1x32xf32>
    %99 = vector.broadcast %98 : vector<1x32xf32> to vector<16x32xf32>
    %c0_78 = arith.constant 0 : index
    %c0_79 = arith.constant 0 : index
    %100 = vector.load %arg19[%c0_78, %c0_79] : memref<20x32xf32, #tpu.memory_space<vmem>>, vector<16x32xf32>
    %101 = arith.truncf %100 : vector<16x32xf32> to vector<16x32xbf16>
    %c1_80 = arith.constant 1 : index
    %c0_81 = arith.constant 0 : index
    %c0_82 = arith.constant 0 : index
    %c0_83 = arith.constant 0 : index
    %102 = vector.load %arg6[%c1_80, %c0_81, %c0_82, %c0_83] : memref<2x3x32x32xbf16, #tpu.memory_space<vmem>>, vector<1x1x32x32xbf16>
    %103 = vector.shape_cast %102 : vector<1x1x32x32xbf16> to vector<32x32xbf16>
    %cst_84 = arith.constant dense<0.000000e+00> : vector<16x32xf32>
    %104 = tpu.matmul %101, %103, %cst_84 {dimension_numbers = #tpu.dot_dimension_numbers<[1], [0], [0], [1], [0, 0, 1, 1], [], []>} : vector<16x32xbf16>, vector<32x32xbf16>, vector<16x32xf32> -> vector<16x32xf32>
    %105 = arith.addf %95, %104 : vector<16x32xf32>
    %c1_85 = arith.constant 1 : index
    %c0_86 = arith.constant 0 : index
    %c0_87 = arith.constant 0 : index
    %c0_88 = arith.constant 0 : index
    %106 = vector.load %arg7[%c1_85, %c0_86, %c0_87, %c0_88] : memref<2x3x32x32xbf16, #tpu.memory_space<vmem>>, vector<1x1x32x32xbf16>
    %107 = vector.shape_cast %106 : vector<1x1x32x32xbf16> to vector<32x32xbf16>
    %cst_89 = arith.constant dense<0.000000e+00> : vector<16x32xf32>
    %108 = tpu.matmul %101, %107, %cst_89 {dimension_numbers = #tpu.dot_dimension_numbers<[1], [0], [0], [1], [0, 0, 1, 1], [], []>} : vector<16x32xbf16>, vector<32x32xbf16>, vector<16x32xf32> -> vector<16x32xf32>
    %109 = arith.addf %99, %108 : vector<16x32xf32>
    %c2_90 = arith.constant 2 : index
    %c0_91 = arith.constant 0 : index
    %110 = vector.load %arg19[%c2_90, %c0_91] : memref<20x32xf32, #tpu.memory_space<vmem>>, vector<16x32xf32>
    %111 = arith.truncf %110 : vector<16x32xf32> to vector<16x32xbf16>
    %c1_92 = arith.constant 1 : index
    %c1_93 = arith.constant 1 : index
    %c0_94 = arith.constant 0 : index
    %c0_95 = arith.constant 0 : index
    %112 = vector.load %arg6[%c1_92, %c1_93, %c0_94, %c0_95] : memref<2x3x32x32xbf16, #tpu.memory_space<vmem>>, vector<1x1x32x32xbf16>
    %113 = vector.shape_cast %112 : vector<1x1x32x32xbf16> to vector<32x32xbf16>
    %cst_96 = arith.constant dense<0.000000e+00> : vector<16x32xf32>
    %114 = tpu.matmul %111, %113, %cst_96 {dimension_numbers = #tpu.dot_dimension_numbers<[1], [0], [0], [1], [0, 0, 1, 1], [], []>} : vector<16x32xbf16>, vector<32x32xbf16>, vector<16x32xf32> -> vector<16x32xf32>
    %115 = arith.addf %105, %114 : vector<16x32xf32>
    %c1_97 = arith.constant 1 : index
    %c1_98 = arith.constant 1 : index
    %c0_99 = arith.constant 0 : index
    %c0_100 = arith.constant 0 : index
    %116 = vector.load %arg7[%c1_97, %c1_98, %c0_99, %c0_100] : memref<2x3x32x32xbf16, #tpu.memory_space<vmem>>, vector<1x1x32x32xbf16>
    %117 = vector.shape_cast %116 : vector<1x1x32x32xbf16> to vector<32x32xbf16>
    %cst_101 = arith.constant dense<0.000000e+00> : vector<16x32xf32>
    %118 = tpu.matmul %111, %117, %cst_101 {dimension_numbers = #tpu.dot_dimension_numbers<[1], [0], [0], [1], [0, 0, 1, 1], [], []>} : vector<16x32xbf16>, vector<32x32xbf16>, vector<16x32xf32> -> vector<16x32xf32>
    %119 = arith.addf %109, %118 : vector<16x32xf32>
    %c4 = arith.constant 4 : index
    %c0_102 = arith.constant 0 : index
    %120 = vector.load %arg19[%c4, %c0_102] : memref<20x32xf32, #tpu.memory_space<vmem>>, vector<16x32xf32>
    %121 = arith.truncf %120 : vector<16x32xf32> to vector<16x32xbf16>
    %c1_103 = arith.constant 1 : index
    %c2_104 = arith.constant 2 : index
    %c0_105 = arith.constant 0 : index
    %c0_106 = arith.constant 0 : index
    %122 = vector.load %arg6[%c1_103, %c2_104, %c0_105, %c0_106] : memref<2x3x32x32xbf16, #tpu.memory_space<vmem>>, vector<1x1x32x32xbf16>
    %123 = vector.shape_cast %122 : vector<1x1x32x32xbf16> to vector<32x32xbf16>
    %cst_107 = arith.constant dense<0.000000e+00> : vector<16x32xf32>
    %124 = tpu.matmul %121, %123, %cst_107 {dimension_numbers = #tpu.dot_dimension_numbers<[1], [0], [0], [1], [0, 0, 1, 1], [], []>} : vector<16x32xbf16>, vector<32x32xbf16>, vector<16x32xf32> -> vector<16x32xf32>
    %125 = arith.addf %115, %124 : vector<16x32xf32>
    %c1_108 = arith.constant 1 : index
    %c2_109 = arith.constant 2 : index
    %c0_110 = arith.constant 0 : index
    %c0_111 = arith.constant 0 : index
    %126 = vector.load %arg7[%c1_108, %c2_109, %c0_110, %c0_111] : memref<2x3x32x32xbf16, #tpu.memory_space<vmem>>, vector<1x1x32x32xbf16>
    %127 = vector.shape_cast %126 : vector<1x1x32x32xbf16> to vector<32x32xbf16>
    %cst_112 = arith.constant dense<0.000000e+00> : vector<16x32xf32>
    %128 = tpu.matmul %121, %127, %cst_112 {dimension_numbers = #tpu.dot_dimension_numbers<[1], [0], [0], [1], [0, 0, 1, 1], [], []>} : vector<16x32xbf16>, vector<32x32xbf16>, vector<16x32xf32> -> vector<16x32xf32>
    %129 = arith.addf %119, %128 : vector<16x32xf32>
    %130 = math.tanh %125 : vector<16x32xf32>
    %cst_113 = arith.constant 5.000000e-01 : f32
    %131 = vector.broadcast %cst_113 : f32 to vector<16x32xf32>
    %132 = arith.mulf %131, %129 : vector<16x32xf32>
    %133 = math.tanh %132 : vector<16x32xf32>
    %cst_114 = arith.constant 1.000000e+00 : f32
    %134 = vector.broadcast %cst_114 : f32 to vector<16x32xf32>
    %135 = arith.addf %133, %134 : vector<16x32xf32>
    %cst_115 = arith.constant 5.000000e-01 : f32
    %136 = vector.broadcast %cst_115 : f32 to vector<16x32xf32>
    %137 = arith.mulf %136, %135 : vector<16x32xf32>
    %138 = arith.mulf %130, %137 : vector<16x32xf32>
    %139 = arith.truncf %138 : vector<16x32xf32> to vector<16x32xbf16>
    %c1_116 = arith.constant 1 : index
    %c0_117 = arith.constant 0 : index
    %c0_118 = arith.constant 0 : index
    %140 = vector.load %arg12[%c1_116, %c0_117, %c0_118] : memref<2x32x32xbf16, #tpu.memory_space<vmem>>, vector<1x32x32xbf16>
    %141 = vector.shape_cast %140 : vector<1x32x32xbf16> to vector<32x32xbf16>
    %cst_119 = arith.constant dense<0.000000e+00> : vector<16x32xf32>
    %142 = tpu.matmul %139, %141, %cst_119 {dimension_numbers = #tpu.dot_dimension_numbers<[1], [0], [0], [1], [0, 0, 1, 1], [], []>} : vector<16x32xbf16>, vector<32x32xbf16>, vector<16x32xf32> -> vector<16x32xf32>
    %143 = arith.addf %81, %142 : vector<16x32xf32>
    %c1_120 = arith.constant 1 : index
    %c0_121 = arith.constant 0 : index
    %c0_122 = arith.constant 0 : index
    %144 = vector.load %arg13[%c1_120, %c0_121, %c0_122] : memref<2x1x32xf32, #tpu.memory_space<vmem>>, vector<1x1x32xf32>
    %145 = vector.shape_cast %144 : vector<1x1x32xf32> to vector<1x32xf32>
    %146 = vector.broadcast %145 : vector<1x32xf32> to vector<16x32xf32>
    %147 = arith.addf %143, %146 : vector<16x32xf32>
    %148 = arith.mulf %147, %8 : vector<16x32xf32>
    %149 = arith.truncf %148 : vector<16x32xf32> to vector<16x32xbf16>
    %c0_123 = arith.constant 0 : index
    %c0_124 = arith.constant 0 : index
    %150 = vector.load %arg14[%c0_123, %c0_124] : memref<32x4xbf16, #tpu.memory_space<vmem>>, vector<32x4xbf16>
    %cst_125 = arith.constant dense<0.000000e+00> : vector<16x4xf32>
    %151 = tpu.matmul %149, %150, %cst_125 {dimension_numbers = #tpu.dot_dimension_numbers<[1], [0], [0], [1], [0, 0, 1, 1], [], []>} : vector<16x32xbf16>, vector<32x4xbf16>, vector<16x4xf32> -> vector<16x4xf32>
    %c0_126 = arith.constant 0 : index
    %c0_127 = arith.constant 0 : index
    %152 = vector.load %arg15[%c0_126, %c0_127] : memref<1x4xf32, #tpu.memory_space<vmem>>, vector<1x4xf32>
    %153 = vector.broadcast %152 : vector<1x4xf32> to vector<16x4xf32>
    %154 = arith.addf %151, %153 : vector<16x4xf32>
    %155 = arith.mulf %154, %10 : vector<16x4xf32>
    %c0_128 = arith.constant 0 : index
    %c0_129 = arith.constant 0 : index
    %156 = vector.load %arg16[%c0_128, %c0_129] : memref<32x4xbf16, #tpu.memory_space<vmem>>, vector<32x4xbf16>
    %cst_130 = arith.constant dense<0.000000e+00> : vector<16x4xf32>
    %157 = tpu.matmul %149, %156, %cst_130 {dimension_numbers = #tpu.dot_dimension_numbers<[1], [0], [0], [1], [0, 0, 1, 1], [], []>} : vector<16x32xbf16>, vector<32x4xbf16>, vector<16x4xf32> -> vector<16x4xf32>
    %c0_131 = arith.constant 0 : index
    %c0_132 = arith.constant 0 : index
    %158 = vector.load %arg17[%c0_131, %c0_132] : memref<1x4xf32, #tpu.memory_space<vmem>>, vector<1x4xf32>
    %159 = vector.broadcast %158 : vector<1x4xf32> to vector<16x4xf32>
    %160 = arith.addf %157, %159 : vector<16x4xf32>
    %161 = arith.mulf %160, %10 : vector<16x4xf32>
    %c0_133 = arith.constant 0 : index
    %c0_134 = arith.constant 0 : index
    %c0_135 = arith.constant 0 : index
    %162 = vector.load %arg3[%c0_133, %c0_134, %c0_135] : memref<1x16x4xf32, #tpu.memory_space<vmem>>, vector<1x16x4xf32>
    %163 = vector.shape_cast %162 : vector<1x16x4xf32> to vector<16x4xf32>
    %164 = math.exp %161 : vector<16x4xf32>
    %165 = arith.mulf %163, %164 : vector<16x4xf32>
    %166 = arith.addf %155, %165 : vector<16x4xf32>
    %167 = arith.mulf %166, %10 : vector<16x4xf32>
    %c0_136 = arith.constant 0 : index
    %c0_137 = arith.constant 0 : index
    %c0_138 = arith.constant 0 : index
    %c0_139 = arith.constant 0 : index
    %168 = vector.load %arg18[%c0_136, %c0_137, %c0_138, %c0_139] : memref<1x3x16x4xf32, #tpu.memory_space<vmem>>, vector<1x1x16x4xf32>
    %169 = vector.shape_cast %168 : vector<1x1x16x4xf32> to vector<16x4xf32>
    %170 = vector.shape_cast %167 : vector<16x4xf32> to vector<1x1x16x4xf32>
    tpu.vector_store %arg18[%c0_136, %c0_137, %c0_138, %c0_139], %170 {strides = array<i32>} : memref<1x3x16x4xf32, #tpu.memory_space<vmem>>, vector<1x1x16x4xf32>,
    %c0_140 = arith.constant 0 : index
    %c1_141 = arith.constant 1 : index
    %c0_142 = arith.constant 0 : index
    %c0_143 = arith.constant 0 : index
    %171 = vector.load %arg18[%c0_140, %c1_141, %c0_142, %c0_143] : memref<1x3x16x4xf32, #tpu.memory_space<vmem>>, vector<1x1x16x4xf32>
    %172 = vector.shape_cast %171 : vector<1x1x16x4xf32> to vector<16x4xf32>
    %173 = vector.shape_cast %155 : vector<16x4xf32> to vector<1x1x16x4xf32>
    tpu.vector_store %arg18[%c0_140, %c1_141, %c0_142, %c0_143], %173 {strides = array<i32>} : memref<1x3x16x4xf32, #tpu.memory_space<vmem>>, vector<1x1x16x4xf32>,
    %c0_144 = arith.constant 0 : index
    %c2_145 = arith.constant 2 : index
    %c0_146 = arith.constant 0 : index
    %c0_147 = arith.constant 0 : index
    %174 = vector.load %arg18[%c0_144, %c2_145, %c0_146, %c0_147] : memref<1x3x16x4xf32, #tpu.memory_space<vmem>>, vector<1x1x16x4xf32>
    %175 = vector.shape_cast %174 : vector<1x1x16x4xf32> to vector<16x4xf32>
    %176 = vector.shape_cast %161 : vector<16x4xf32> to vector<1x1x16x4xf32>
    tpu.vector_store %arg18[%c0_144, %c2_145, %c0_146, %c0_147], %176 {strides = array<i32>} : memref<1x3x16x4xf32, #tpu.memory_space<vmem>>, vector<1x1x16x4xf32>,
    return
  }
  func.func @transform_0(%arg0: i32, %arg1: memref<2xi32, #tpu.memory_space<smem>>) -> (i32, i32, i32) {
    %c0_i32 = arith.constant 0 : i32
    %c0_i32_0 = arith.constant 0 : i32
    %c0_i32_1 = arith.constant 0 : i32
    return %arg0, %c0_i32, %c0_i32_0 : i32, i32, i32
  }
  func.func @transform_1(%arg0: i32, %arg1: memref<2xi32, #tpu.memory_space<smem>>) -> (i32, i32, i32) {
    %c0_i32 = arith.constant 0 : i32
    %c0_i32_0 = arith.constant 0 : i32
    %c0_i32_1 = arith.constant 0 : i32
    return %arg0, %c0_i32, %c0_i32_0 : i32, i32, i32
  }
  func.func @transform_2(%arg0: i32, %arg1: memref<2xi32, #tpu.memory_space<smem>>) -> (i32, i32) {
    %c0_i32 = arith.constant 0 : i32
    %c0_i32_0 = arith.constant 0 : i32
    %c0_i32_1 = arith.constant 0 : i32
    return %c0_i32, %c0_i32_0 : i32, i32
  }
  func.func @transform_3(%arg0: i32, %arg1: memref<2xi32, #tpu.memory_space<smem>>) -> (i32, i32) {
    %c0_i32 = arith.constant 0 : i32
    %c0_i32_0 = arith.constant 0 : i32
    %c0_i32_1 = arith.constant 0 : i32
    return %c0_i32, %c0_i32_0 : i32, i32
  }
  func.func @transform_4(%arg0: i32, %arg1: memref<2xi32, #tpu.memory_space<smem>>) -> (i32, i32, i32, i32) {
    %c0_i32 = arith.constant 0 : i32
    %c0_i32_0 = arith.constant 0 : i32
    %c0_i32_1 = arith.constant 0 : i32
    %c0_i32_2 = arith.constant 0 : i32
    %c0_i32_3 = arith.constant 0 : i32
    return %c0_i32, %c0_i32_0, %c0_i32_1, %c0_i32_2 : i32, i32, i32, i32
  }
  func.func @transform_5(%arg0: i32, %arg1: memref<2xi32, #tpu.memory_space<smem>>) -> (i32, i32, i32, i32) {
    %c0_i32 = arith.constant 0 : i32
    %c0_i32_0 = arith.constant 0 : i32
    %c0_i32_1 = arith.constant 0 : i32
    %c0_i32_2 = arith.constant 0 : i32
    %c0_i32_3 = arith.constant 0 : i32
    return %c0_i32, %c0_i32_0, %c0_i32_1, %c0_i32_2 : i32, i32, i32, i32
  }
  func.func @transform_6(%arg0: i32, %arg1: memref<2xi32, #tpu.memory_space<smem>>) -> (i32, i32, i32) {
    %c0_i32 = arith.constant 0 : i32
    %c0_i32_0 = arith.constant 0 : i32
    %c0_i32_1 = arith.constant 0 : i32
    %c0_i32_2 = arith.constant 0 : i32
    return %c0_i32, %c0_i32_0, %c0_i32_1 : i32, i32, i32
  }
  func.func @transform_7(%arg0: i32, %arg1: memref<2xi32, #tpu.memory_space<smem>>) -> (i32, i32, i32) {
    %c0_i32 = arith.constant 0 : i32
    %c0_i32_0 = arith.constant 0 : i32
    %c0_i32_1 = arith.constant 0 : i32
    %c0_i32_2 = arith.constant 0 : i32
    return %c0_i32, %c0_i32_0, %c0_i32_1 : i32, i32, i32
  }
  func.func @transform_8(%arg0: i32, %arg1: memref<2xi32, #tpu.memory_space<smem>>) -> (i32, i32, i32) {
    %c0_i32 = arith.constant 0 : i32
    %c0_i32_0 = arith.constant 0 : i32
    %c0_i32_1 = arith.constant 0 : i32
    %c0_i32_2 = arith.constant 0 : i32
    return %c0_i32, %c0_i32_0, %c0_i32_1 : i32, i32, i32
  }
  func.func @transform_9(%arg0: i32, %arg1: memref<2xi32, #tpu.memory_space<smem>>) -> (i32, i32, i32) {
    %c0_i32 = arith.constant 0 : i32
    %c0_i32_0 = arith.constant 0 : i32
    %c0_i32_1 = arith.constant 0 : i32
    %c0_i32_2 = arith.constant 0 : i32
    return %c0_i32, %c0_i32_0, %c0_i32_1 : i32, i32, i32
  }
  func.func @transform_10(%arg0: i32, %arg1: memref<2xi32, #tpu.memory_space<smem>>) -> (i32, i32, i32) {
    %c0_i32 = arith.constant 0 : i32
    %c0_i32_0 = arith.constant 0 : i32
    %c0_i32_1 = arith.constant 0 : i32
    %c0_i32_2 = arith.constant 0 : i32
    return %c0_i32, %c0_i32_0, %c0_i32_1 : i32, i32, i32
  }
  func.func @transform_11(%arg0: i32, %arg1: memref<2xi32, #tpu.memory_space<smem>>) -> (i32, i32, i32) {
    %c0_i32 = arith.constant 0 : i32
    %c0_i32_0 = arith.constant 0 : i32
    %c0_i32_1 = arith.constant 0 : i32
    %c0_i32_2 = arith.constant 0 : i32
    return %c0_i32, %c0_i32_0, %c0_i32_1 : i32, i32, i32
  }
  func.func @transform_12(%arg0: i32, %arg1: memref<2xi32, #tpu.memory_space<smem>>) -> (i32, i32) {
    %c0_i32 = arith.constant 0 : i32
    %c0_i32_0 = arith.constant 0 : i32
    %c0_i32_1 = arith.constant 0 : i32
    return %c0_i32, %c0_i32_0 : i32, i32
  }
  func.func @transform_13(%arg0: i32, %arg1: memref<2xi32, #tpu.memory_space<smem>>) -> (i32, i32) {
    %c0_i32 = arith.constant 0 : i32
    %c0_i32_0 = arith.constant 0 : i32
    %c0_i32_1 = arith.constant 0 : i32
    return %c0_i32, %c0_i32_0 : i32, i32
  }
  func.func @transform_14(%arg0: i32, %arg1: memref<2xi32, #tpu.memory_space<smem>>) -> (i32, i32) {
    %c0_i32 = arith.constant 0 : i32
    %c0_i32_0 = arith.constant 0 : i32
    %c0_i32_1 = arith.constant 0 : i32
    return %c0_i32, %c0_i32_0 : i32, i32
  }
  func.func @transform_15(%arg0: i32, %arg1: memref<2xi32, #tpu.memory_space<smem>>) -> (i32, i32) {
    %c0_i32 = arith.constant 0 : i32
    %c0_i32_0 = arith.constant 0 : i32
    %c0_i32_1 = arith.constant 0 : i32
    return %c0_i32, %c0_i32_0 : i32, i32
  }
  func.func @transform_16(%arg0: i32, %arg1: memref<2xi32, #tpu.memory_space<smem>>) -> (i32, i32, i32, i32) {
    %c0_i32 = arith.constant 0 : i32
    %c0_i32_0 = arith.constant 0 : i32
    %c0_i32_1 = arith.constant 0 : i32
    %c0_i32_2 = arith.constant 0 : i32
    return %arg0, %c0_i32, %c0_i32_0, %c0_i32_1 : i32, i32, i32, i32
  }
}

module attributes {stable_mosaic.version = 11 : i64} {
  func.func @_posterior_encoder_kernel(%arg0: i32, %arg1: memref<2xi32, #tpu.memory_space<smem>>, %arg2: memref<1x16x32xf32, #tpu.memory_space<vmem>>, %arg3: memref<1x16x4xf32, #tpu.memory_space<vmem>>, %arg4: memref<32x32xbf16, #tpu.memory_space<vmem>>, %arg5: memref<1x32xf32, #tpu.memory_space<vmem>>, %arg6: memref<2x3x32x32xbf16, #tpu.memory_space<vmem>>, %arg7: memref<2x3x32x32xbf16, #tpu.memory_space<vmem>>, %arg8: memref<2x1x32xf32, #tpu.memory_space<vmem>>, %arg9: memref<2x1x32xf32, #tpu.memory_space<vmem>>, %arg10: memref<1x32x32xbf16, #tpu.memory_space<vmem>>, %arg11: memref<1x1x32xf32, #tpu.memory_space<vmem>>, %arg12: memref<2x32x32xbf16, #tpu.memory_space<vmem>>, %arg13: memref<2x1x32xf32, #tpu.memory_space<vmem>>, %arg14: memref<32x4xbf16, #tpu.memory_space<vmem>>, %arg15: memref<1x4xf32, #tpu.memory_space<vmem>>, %arg16: memref<32x4xbf16, #tpu.memory_space<vmem>>, %arg17: memref<1x4xf32, #tpu.memory_space<vmem>>, %arg18: memref<1x3x16x4xf32, #tpu.memory_space<vmem>>, %arg19: memref<20x32xf32, #tpu.memory_space<vmem>>) attributes {dimension_semantics = [#tpu.dimension_semantics<parallel>], iteration_bounds = array<i64: 2>, scalar_prefetch = 1 : i64, scratch_operands = 1 : i64, tpu.core_type = #tpu.core_type<tc>, window_params = [{transform_indices = @transform_0, window_bounds = array<i64: 1, 16, 32>}, {transform_indices = @transform_1, window_bounds = array<i64: 1, 16, 4>}, {pipeline_mode = #tpu.pipeline_mode<synchronous>, transform_indices = @transform_2, window_bounds = array<i64: 32, 32>}, {pipeline_mode = #tpu.pipeline_mode<synchronous>, transform_indices = @transform_3, window_bounds = array<i64: 1, 32>}, {pipeline_mode = #tpu.pipeline_mode<synchronous>, transform_indices = @transform_4, window_bounds = array<i64: 2, 3, 32, 32>}, {pipeline_mode = #tpu.pipeline_mode<synchronous>, transform_indices = @transform_5, window_bounds = array<i64: 2, 3, 32, 32>}, {pipeline_mode = #tpu.pipeline_mode<synchronous>, transform_indices = @transform_6, window_bounds = array<i64: 2, 1, 32>}, {pipeline_mode = #tpu.pipeline_mode<synchronous>, transform_indices = @transform_7, window_bounds = array<i64: 2, 1, 32>}, {pipeline_mode = #tpu.pipeline_mode<synchronous>, transform_indices = @transform_8, window_bounds = array<i64: 1, 32, 32>}, {pipeline_mode = #tpu.pipeline_mode<synchronous>, transform_indices = @transform_9, window_bounds = array<i64: 1, 1, 32>}, {pipeline_mode = #tpu.pipeline_mode<synchronous>, transform_indices = @transform_10, window_bounds = array<i64: 2, 32, 32>}, {pipeline_mode = #tpu.pipeline_mode<synchronous>, transform_indices = @transform_11, window_bounds = array<i64: 2, 1, 32>}, {pipeline_mode = #tpu.pipeline_mode<synchronous>, transform_indices = @transform_12, window_bounds = array<i64: 32, 4>}, {pipeline_mode = #tpu.pipeline_mode<synchronous>, transform_indices = @transform_13, window_bounds = array<i64: 1, 4>}, {pipeline_mode = #tpu.pipeline_mode<synchronous>, transform_indices = @transform_14, window_bounds = array<i64: 32, 4>}, {pipeline_mode = #tpu.pipeline_mode<synchronous>, transform_indices = @transform_15, window_bounds = array<i64: 1, 4>}, {transform_indices = @transform_16, window_bounds = array<i64: 1, 3, 16, 4>}]} {
    %0 = arith.index_cast %arg0 : i32 to index
    %1 = memref.load %arg1[%0] : memref<2xi32, #tpu.memory_space<smem>>
    %2 = tpu.iota {dimensions = array<i32: 0>} : vector<16x1xi32>
    %3 = vector.broadcast %1 : i32 to vector<16x1xi32>
    %4 = arith.cmpi slt, %2, %3 : vector<16x1xi32>
    %5 = arith.extui %4 : vector<16x1xi1> to vector<16x1xi32>
    %6 = arith.sitofp %5 : vector<16x1xi32> to vector<16x1xf32>
    %7 = vector.shape_cast %6 : vector<16x1xf32> to vector<16x1xf32>
    %8 = vector.broadcast %7 : vector<16x1xf32> to vector<16x32xf32>
    %9 = vector.shape_cast %6 : vector<16x1xf32> to vector<16x1xf32>
    %10 = vector.broadcast %9 : vector<16x1xf32> to vector<16x4xf32>
    %c0 = arith.constant 0 : index
    %c0_0 = arith.constant 0 : index
    %c0_1 = arith.constant 0 : index
    %11 = vector.load %arg2[%c0, %c0_0, %c0_1] : memref<1x16x32xf32, #tpu.memory_space<vmem>>, vector<1x16x32xf32>
    %12 = vector.shape_cast %11 : vector<1x16x32xf32> to vector<16x32xf32>
    %13 = arith.truncf %12 : vector<16x32xf32> to vector<16x32xbf16>
    %c0_2 = arith.constant 0 : index
    %c0_3 = arith.constant 0 : index
    %14 = vector.load %arg4[%c0_2, %c0_3] : memref<32x32xbf16, #tpu.memory_space<vmem>>, vector<32x32xbf16>
    %cst = arith.constant dense<0.000000e+00> : vector<16x32xf32>
    %15 = tpu.matmul %13, %14, %cst {dimension_numbers = #tpu.dot_dimension_numbers<[1], [0], [0], [1], [0, 0, 1, 1], [], []>} : vector<16x32xbf16>, vector<32x32xbf16>, vector<16x32xf32> -> vector<16x32xf32>
    %c0_4 = arith.constant 0 : index
    %c0_5 = arith.constant 0 : index
    %16 = vector.load %arg5[%c0_4, %c0_5] : memref<1x32xf32, #tpu.memory_space<vmem>>, vector<1x32xf32>
    %17 = vector.broadcast %16 : vector<1x32xf32> to vector<16x32xf32>
    %18 = arith.addf %15, %17 : vector<16x32xf32>
    %19 = arith.mulf %18, %8 : vector<16x32xf32>
    %cst_6 = arith.constant 0.000000e+00 : f32
    %20 = vector.broadcast %cst_6 : f32 to vector<2x32xf32>
    %c0_7 = arith.constant 0 : index
    %c0_8 = arith.constant 0 : index
    %21 = vector.load %arg19[%c0_7, %c0_8] : memref<20x32xf32, #tpu.memory_space<vmem>>, vector<2x32xf32>
    tpu.vector_store %arg19[%c0_7, %c0_8], %20 {strides = array<i32>} : memref<20x32xf32, #tpu.memory_space<vmem>>, vector<2x32xf32>,
    %cst_9 = arith.constant 0.000000e+00 : f32
    %22 = vector.broadcast %cst_9 : f32 to vector<2x32xf32>
    %c18 = arith.constant 18 : index
    %c0_10 = arith.constant 0 : index
    %23 = vector.load %arg19[%c18, %c0_10] : memref<20x32xf32, #tpu.memory_space<vmem>>, vector<2x32xf32>
    tpu.vector_store %arg19[%c18, %c0_10], %22 {strides = array<i32>} : memref<20x32xf32, #tpu.memory_space<vmem>>, vector<2x32xf32>,
    %c2 = arith.constant 2 : index
    %c0_11 = arith.constant 0 : index
    %24 = vector.load %arg19[%c2, %c0_11] : memref<20x32xf32, #tpu.memory_space<vmem>>, vector<16x32xf32>
    tpu.vector_store %arg19[%c2, %c0_11], %19 {strides = array<i32>} : memref<20x32xf32, #tpu.memory_space<vmem>>, vector<16x32xf32>,
    %cst_12 = arith.constant 0.000000e+00 : f32
    %25 = vector.broadcast %cst_12 : f32 to vector<16x32xf32>
    %c0_13 = arith.constant 0 : index
    %c0_14 = arith.constant 0 : index
    %c0_15 = arith.constant 0 : index
    %26 = vector.load %arg8[%c0_13, %c0_14, %c0_15] : memref<2x1x32xf32, #tpu.memory_space<vmem>>, vector<1x1x32xf32>
    %27 = vector.shape_cast %26 : vector<1x1x32xf32> to vector<1x32xf32>
    %28 = vector.shape_cast %27 : vector<1x32xf32> to vector<1x32xf32>
    %29 = vector.broadcast %28 : vector<1x32xf32> to vector<16x32xf32>
    %c0_16 = arith.constant 0 : index
    %c0_17 = arith.constant 0 : index
    %c0_18 = arith.constant 0 : index
    %30 = vector.load %arg9[%c0_16, %c0_17, %c0_18] : memref<2x1x32xf32, #tpu.memory_space<vmem>>, vector<1x1x32xf32>
    %31 = vector.shape_cast %30 : vector<1x1x32xf32> to vector<1x32xf32>
    %32 = vector.shape_cast %31 : vector<1x32xf32> to vector<1x32xf32>
    %33 = vector.broadcast %32 : vector<1x32xf32> to vector<16x32xf32>
    %c1 = arith.constant 1 : index
    %c0_19 = arith.constant 0 : index
    %34 = vector.load %arg19[%c1, %c0_19] : memref<20x32xf32, #tpu.memory_space<vmem>>, vector<16x32xf32>
    %35 = arith.truncf %34 : vector<16x32xf32> to vector<16x32xbf16>
    %c0_20 = arith.constant 0 : index
    %c0_21 = arith.constant 0 : index
    %c0_22 = arith.constant 0 : index
    %c0_23 = arith.constant 0 : index
    %36 = vector.load %arg6[%c0_20, %c0_21, %c0_22, %c0_23] : memref<2x3x32x32xbf16, #tpu.memory_space<vmem>>, vector<1x1x32x32xbf16>
    %37 = vector.shape_cast %36 : vector<1x1x32x32xbf16> to vector<32x32xbf16>
    %cst_24 = arith.constant dense<0.000000e+00> : vector<16x32xf32>
    %38 = tpu.matmul %35, %37, %cst_24 {dimension_numbers = #tpu.dot_dimension_numbers<[1], [0], [0], [1], [0, 0, 1, 1], [], []>} : vector<16x32xbf16>, vector<32x32xbf16>, vector<16x32xf32> -> vector<16x32xf32>
    %39 = arith.addf %29, %38 : vector<16x32xf32>
    %c0_25 = arith.constant 0 : index
    %c0_26 = arith.constant 0 : index
    %c0_27 = arith.constant 0 : index
    %c0_28 = arith.constant 0 : index
    %40 = vector.load %arg7[%c0_25, %c0_26, %c0_27, %c0_28] : memref<2x3x32x32xbf16, #tpu.memory_space<vmem>>, vector<1x1x32x32xbf16>
    %41 = vector.shape_cast %40 : vector<1x1x32x32xbf16> to vector<32x32xbf16>
    %cst_29 = arith.constant dense<0.000000e+00> : vector<16x32xf32>
    %42 = tpu.matmul %35, %41, %cst_29 {dimension_numbers = #tpu.dot_dimension_numbers<[1], [0], [0], [1], [0, 0, 1, 1], [], []>} : vector<16x32xbf16>, vector<32x32xbf16>, vector<16x32xf32> -> vector<16x32xf32>
    %43 = arith.addf %33, %42 : vector<16x32xf32>
    %c2_30 = arith.constant 2 : index
    %c0_31 = arith.constant 0 : index
    %44 = vector.load %arg19[%c2_30, %c0_31] : memref<20x32xf32, #tpu.memory_space<vmem>>, vector<16x32xf32>
    %45 = arith.truncf %44 : vector<16x32xf32> to vector<16x32xbf16>
    %c0_32 = arith.constant 0 : index
    %c1_33 = arith.constant 1 : index
    %c0_34 = arith.constant 0 : index
    %c0_35 = arith.constant 0 : index
    %46 = vector.load %arg6[%c0_32, %c1_33, %c0_34, %c0_35] : memref<2x3x32x32xbf16, #tpu.memory_space<vmem>>, vector<1x1x32x32xbf16>
    %47 = vector.shape_cast %46 : vector<1x1x32x32xbf16> to vector<32x32xbf16>
    %cst_36 = arith.constant dense<0.000000e+00> : vector<16x32xf32>
    %48 = tpu.matmul %45, %47, %cst_36 {dimension_numbers = #tpu.dot_dimension_numbers<[1], [0], [0], [1], [0, 0, 1, 1], [], []>} : vector<16x32xbf16>, vector<32x32xbf16>, vector<16x32xf32> -> vector<16x32xf32>
    %49 = arith.addf %39, %48 : vector<16x32xf32>
    %c0_37 = arith.constant 0 : index
    %c1_38 = arith.constant 1 : index
    %c0_39 = arith.constant 0 : index
    %c0_40 = arith.constant 0 : index
    %50 = vector.load %arg7[%c0_37, %c1_38, %c0_39, %c0_40] : memref<2x3x32x32xbf16, #tpu.memory_space<vmem>>, vector<1x1x32x32xbf16>
    %51 = vector.shape_cast %50 : vector<1x1x32x32xbf16> to vector<32x32xbf16>
    %cst_41 = arith.constant dense<0.000000e+00> : vector<16x32xf32>
    %52 = tpu.matmul %45, %51, %cst_41 {dimension_numbers = #tpu.dot_dimension_numbers<[1], [0], [0], [1], [0, 0, 1, 1], [], []>} : vector<16x32xbf16>, vector<32x32xbf16>, vector<16x32xf32> -> vector<16x32xf32>
    %53 = arith.addf %43, %52 : vector<16x32xf32>
    %c3 = arith.constant 3 : index
    %c0_42 = arith.constant 0 : index
    %54 = vector.load %arg19[%c3, %c0_42] : memref<20x32xf32, #tpu.memory_space<vmem>>, vector<16x32xf32>
    %55 = arith.truncf %54 : vector<16x32xf32> to vector<16x32xbf16>
    %c0_43 = arith.constant 0 : index
    %c2_44 = arith.constant 2 : index
    %c0_45 = arith.constant 0 : index
    %c0_46 = arith.constant 0 : index
    %56 = vector.load %arg6[%c0_43, %c2_44, %c0_45, %c0_46] : memref<2x3x32x32xbf16, #tpu.memory_space<vmem>>, vector<1x1x32x32xbf16>
    %57 = vector.shape_cast %56 : vector<1x1x32x32xbf16> to vector<32x32xbf16>
    %cst_47 = arith.constant dense<0.000000e+00> : vector<16x32xf32>
    %58 = tpu.matmul %55, %57, %cst_47 {dimension_numbers = #tpu.dot_dimension_numbers<[1], [0], [0], [1], [0, 0, 1, 1], [], []>} : vector<16x32xbf16>, vector<32x32xbf16>, vector<16x32xf32> -> vector<16x32xf32>
    %59 = arith.addf %49, %58 : vector<16x32xf32>
    %c0_48 = arith.constant 0 : index
    %c2_49 = arith.constant 2 : index
    %c0_50 = arith.constant 0 : index
    %c0_51 = arith.constant 0 : index
    %60 = vector.load %arg7[%c0_48, %c2_49, %c0_50, %c0_51] : memref<2x3x32x32xbf16, #tpu.memory_space<vmem>>, vector<1x1x32x32xbf16>
    %61 = vector.shape_cast %60 : vector<1x1x32x32xbf16> to vector<32x32xbf16>
    %cst_52 = arith.constant dense<0.000000e+00> : vector<16x32xf32>
    %62 = tpu.matmul %55, %61, %cst_52 {dimension_numbers = #tpu.dot_dimension_numbers<[1], [0], [0], [1], [0, 0, 1, 1], [], []>} : vector<16x32xbf16>, vector<32x32xbf16>, vector<16x32xf32> -> vector<16x32xf32>
    %63 = arith.addf %53, %62 : vector<16x32xf32>
    %64 = math.tanh %59 : vector<16x32xf32>
    %cst_53 = arith.constant 5.000000e-01 : f32
    %65 = vector.broadcast %cst_53 : f32 to vector<16x32xf32>
    %66 = arith.mulf %65, %63 : vector<16x32xf32>
    %67 = math.tanh %66 : vector<16x32xf32>
    %cst_54 = arith.constant 1.000000e+00 : f32
    %68 = vector.broadcast %cst_54 : f32 to vector<16x32xf32>
    %69 = arith.addf %67, %68 : vector<16x32xf32>
    %cst_55 = arith.constant 5.000000e-01 : f32
    %70 = vector.broadcast %cst_55 : f32 to vector<16x32xf32>
    %71 = arith.mulf %70, %69 : vector<16x32xf32>
    %72 = arith.mulf %64, %71 : vector<16x32xf32>
    %73 = arith.truncf %72 : vector<16x32xf32> to vector<16x32xbf16>
    %c0_56 = arith.constant 0 : index
    %c0_57 = arith.constant 0 : index
    %c0_58 = arith.constant 0 : index
    %74 = vector.load %arg12[%c0_56, %c0_57, %c0_58] : memref<2x32x32xbf16, #tpu.memory_space<vmem>>, vector<1x32x32xbf16>
    %75 = vector.shape_cast %74 : vector<1x32x32xbf16> to vector<32x32xbf16>
    %cst_59 = arith.constant dense<0.000000e+00> : vector<16x32xf32>
    %76 = tpu.matmul %73, %75, %cst_59 {dimension_numbers = #tpu.dot_dimension_numbers<[1], [0], [0], [1], [0, 0, 1, 1], [], []>} : vector<16x32xbf16>, vector<32x32xbf16>, vector<16x32xf32> -> vector<16x32xf32>
    %77 = arith.addf %25, %76 : vector<16x32xf32>
    %c0_60 = arith.constant 0 : index
    %c0_61 = arith.constant 0 : index
    %c0_62 = arith.constant 0 : index
    %78 = vector.load %arg13[%c0_60, %c0_61, %c0_62] : memref<2x1x32xf32, #tpu.memory_space<vmem>>, vector<1x1x32xf32>
    %79 = vector.shape_cast %78 : vector<1x1x32xf32> to vector<1x32xf32>
    %80 = vector.broadcast %79 : vector<1x32xf32> to vector<16x32xf32>
    %81 = arith.addf %77, %80 : vector<16x32xf32>
    %c0_63 = arith.constant 0 : index
    %c0_64 = arith.constant 0 : index
    %c0_65 = arith.constant 0 : index
    %82 = vector.load %arg10[%c0_63, %c0_64, %c0_65] : memref<1x32x32xbf16, #tpu.memory_space<vmem>>, vector<1x32x32xbf16>
    %83 = vector.shape_cast %82 : vector<1x32x32xbf16> to vector<32x32xbf16>
    %cst_66 = arith.constant dense<0.000000e+00> : vector<16x32xf32>
    %84 = tpu.matmul %73, %83, %cst_66 {dimension_numbers = #tpu.dot_dimension_numbers<[1], [0], [0], [1], [0, 0, 1, 1], [], []>} : vector<16x32xbf16>, vector<32x32xbf16>, vector<16x32xf32> -> vector<16x32xf32>
    %c0_67 = arith.constant 0 : index
    %c0_68 = arith.constant 0 : index
    %c0_69 = arith.constant 0 : index
    %85 = vector.load %arg11[%c0_67, %c0_68, %c0_69] : memref<1x1x32xf32, #tpu.memory_space<vmem>>, vector<1x1x32xf32>
    %86 = vector.shape_cast %85 : vector<1x1x32xf32> to vector<1x32xf32>
    %87 = vector.broadcast %86 : vector<1x32xf32> to vector<16x32xf32>
    %88 = arith.addf %84, %87 : vector<16x32xf32>
    %89 = arith.addf %19, %88 : vector<16x32xf32>
    %90 = arith.mulf %89, %8 : vector<16x32xf32>
    %c2_70 = arith.constant 2 : index
    %c0_71 = arith.constant 0 : index
    %91 = vector.load %arg19[%c2_70, %c0_71] : memref<20x32xf32, #tpu.memory_space<vmem>>, vector<16x32xf32>
    tpu.vector_store %arg19[%c2_70, %c0_71], %90 {strides = array<i32>} : memref<20x32xf32, #tpu.memory_space<vmem>>, vector<16x32xf32>,
    %c1_72 = arith.constant 1 : index
    %c0_73 = arith.constant 0 : index
    %c0_74 = arith.constant 0 : index
    %92 = vector.load %arg8[%c1_72, %c0_73, %c0_74] : memref<2x1x32xf32, #tpu.memory_space<vmem>>, vector<1x1x32xf32>
    %93 = vector.shape_cast %92 : vector<1x1x32xf32> to vector<1x32xf32>
    %94 = vector.shape_cast %93 : vector<1x32xf32> to vector<1x32xf32>
    %95 = vector.broadcast %94 : vector<1x32xf32> to vector<16x32xf32>
    %c1_75 = arith.constant 1 : index
    %c0_76 = arith.constant 0 : index
    %c0_77 = arith.constant 0 : index
    %96 = vector.load %arg9[%c1_75, %c0_76, %c0_77] : memref<2x1x32xf32, #tpu.memory_space<vmem>>, vector<1x1x32xf32>
    %97 = vector.shape_cast %96 : vector<1x1x32xf32> to vector<1x32xf32>
    %98 = vector.shape_cast %97 : vector<1x32xf32> to vector<1x32xf32>
    %99 = vector.broadcast %98 : vector<1x32xf32> to vector<16x32xf32>
    %c0_78 = arith.constant 0 : index
    %c0_79 = arith.constant 0 : index
    %100 = vector.load %arg19[%c0_78, %c0_79] : memref<20x32xf32, #tpu.memory_space<vmem>>, vector<16x32xf32>
    %101 = arith.truncf %100 : vector<16x32xf32> to vector<16x32xbf16>
    %c1_80 = arith.constant 1 : index
    %c0_81 = arith.constant 0 : index
    %c0_82 = arith.constant 0 : index
    %c0_83 = arith.constant 0 : index
    %102 = vector.load %arg6[%c1_80, %c0_81, %c0_82, %c0_83] : memref<2x3x32x32xbf16, #tpu.memory_space<vmem>>, vector<1x1x32x32xbf16>
    %103 = vector.shape_cast %102 : vector<1x1x32x32xbf16> to vector<32x32xbf16>
    %cst_84 = arith.constant dense<0.000000e+00> : vector<16x32xf32>
    %104 = tpu.matmul %101, %103, %cst_84 {dimension_numbers = #tpu.dot_dimension_numbers<[1], [0], [0], [1], [0, 0, 1, 1], [], []>} : vector<16x32xbf16>, vector<32x32xbf16>, vector<16x32xf32> -> vector<16x32xf32>
    %105 = arith.addf %95, %104 : vector<16x32xf32>
    %c1_85 = arith.constant 1 : index
    %c0_86 = arith.constant 0 : index
    %c0_87 = arith.constant 0 : index
    %c0_88 = arith.constant 0 : index
    %106 = vector.load %arg7[%c1_85, %c0_86, %c0_87, %c0_88] : memref<2x3x32x32xbf16, #tpu.memory_space<vmem>>, vector<1x1x32x32xbf16>
    %107 = vector.shape_cast %106 : vector<1x1x32x32xbf16> to vector<32x32xbf16>
    %cst_89 = arith.constant dense<0.000000e+00> : vector<16x32xf32>
    %108 = tpu.matmul %101, %107, %cst_89 {dimension_numbers = #tpu.dot_dimension_numbers<[1], [0], [0], [1], [0, 0, 1, 1], [], []>} : vector<16x32xbf16>, vector<32x32xbf16>, vector<16x32xf32> -> vector<16x32xf32>
    %109 = arith.addf %99, %108 : vector<16x32xf32>
    %c2_90 = arith.constant 2 : index
    %c0_91 = arith.constant 0 : index
    %110 = vector.load %arg19[%c2_90, %c0_91] : memref<20x32xf32, #tpu.memory_space<vmem>>, vector<16x32xf32>
    %111 = arith.truncf %110 : vector<16x32xf32> to vector<16x32xbf16>
    %c1_92 = arith.constant 1 : index
    %c1_93 = arith.constant 1 : index
    %c0_94 = arith.constant 0 : index
    %c0_95 = arith.constant 0 : index
    %112 = vector.load %arg6[%c1_92, %c1_93, %c0_94, %c0_95] : memref<2x3x32x32xbf16, #tpu.memory_space<vmem>>, vector<1x1x32x32xbf16>
    %113 = vector.shape_cast %112 : vector<1x1x32x32xbf16> to vector<32x32xbf16>
    %cst_96 = arith.constant dense<0.000000e+00> : vector<16x32xf32>
    %114 = tpu.matmul %111, %113, %cst_96 {dimension_numbers = #tpu.dot_dimension_numbers<[1], [0], [0], [1], [0, 0, 1, 1], [], []>} : vector<16x32xbf16>, vector<32x32xbf16>, vector<16x32xf32> -> vector<16x32xf32>
    %115 = arith.addf %105, %114 : vector<16x32xf32>
    %c1_97 = arith.constant 1 : index
    %c1_98 = arith.constant 1 : index
    %c0_99 = arith.constant 0 : index
    %c0_100 = arith.constant 0 : index
    %116 = vector.load %arg7[%c1_97, %c1_98, %c0_99, %c0_100] : memref<2x3x32x32xbf16, #tpu.memory_space<vmem>>, vector<1x1x32x32xbf16>
    %117 = vector.shape_cast %116 : vector<1x1x32x32xbf16> to vector<32x32xbf16>
    %cst_101 = arith.constant dense<0.000000e+00> : vector<16x32xf32>
    %118 = tpu.matmul %111, %117, %cst_101 {dimension_numbers = #tpu.dot_dimension_numbers<[1], [0], [0], [1], [0, 0, 1, 1], [], []>} : vector<16x32xbf16>, vector<32x32xbf16>, vector<16x32xf32> -> vector<16x32xf32>
    %119 = arith.addf %109, %118 : vector<16x32xf32>
    %c4 = arith.constant 4 : index
    %c0_102 = arith.constant 0 : index
    %120 = vector.load %arg19[%c4, %c0_102] : memref<20x32xf32, #tpu.memory_space<vmem>>, vector<16x32xf32>
    %121 = arith.truncf %120 : vector<16x32xf32> to vector<16x32xbf16>
    %c1_103 = arith.constant 1 : index
    %c2_104 = arith.constant 2 : index
    %c0_105 = arith.constant 0 : index
    %c0_106 = arith.constant 0 : index
    %122 = vector.load %arg6[%c1_103, %c2_104, %c0_105, %c0_106] : memref<2x3x32x32xbf16, #tpu.memory_space<vmem>>, vector<1x1x32x32xbf16>
    %123 = vector.shape_cast %122 : vector<1x1x32x32xbf16> to vector<32x32xbf16>
    %cst_107 = arith.constant dense<0.000000e+00> : vector<16x32xf32>
    %124 = tpu.matmul %121, %123, %cst_107 {dimension_numbers = #tpu.dot_dimension_numbers<[1], [0], [0], [1], [0, 0, 1, 1], [], []>} : vector<16x32xbf16>, vector<32x32xbf16>, vector<16x32xf32> -> vector<16x32xf32>
    %125 = arith.addf %115, %124 : vector<16x32xf32>
    %c1_108 = arith.constant 1 : index
    %c2_109 = arith.constant 2 : index
    %c0_110 = arith.constant 0 : index
    %c0_111 = arith.constant 0 : index
    %126 = vector.load %arg7[%c1_108, %c2_109, %c0_110, %c0_111] : memref<2x3x32x32xbf16, #tpu.memory_space<vmem>>, vector<1x1x32x32xbf16>
    %127 = vector.shape_cast %126 : vector<1x1x32x32xbf16> to vector<32x32xbf16>
    %cst_112 = arith.constant dense<0.000000e+00> : vector<16x32xf32>
    %128 = tpu.matmul %121, %127, %cst_112 {dimension_numbers = #tpu.dot_dimension_numbers<[1], [0], [0], [1], [0, 0, 1, 1], [], []>} : vector<16x32xbf16>, vector<32x32xbf16>, vector<16x32xf32> -> vector<16x32xf32>
    %129 = arith.addf %119, %128 : vector<16x32xf32>
    %130 = math.tanh %125 : vector<16x32xf32>
    %cst_113 = arith.constant 5.000000e-01 : f32
    %131 = vector.broadcast %cst_113 : f32 to vector<16x32xf32>
    %132 = arith.mulf %131, %129 : vector<16x32xf32>
    %133 = math.tanh %132 : vector<16x32xf32>
    %cst_114 = arith.constant 1.000000e+00 : f32
    %134 = vector.broadcast %cst_114 : f32 to vector<16x32xf32>
    %135 = arith.addf %133, %134 : vector<16x32xf32>
    %cst_115 = arith.constant 5.000000e-01 : f32
    %136 = vector.broadcast %cst_115 : f32 to vector<16x32xf32>
    %137 = arith.mulf %136, %135 : vector<16x32xf32>
    %138 = arith.mulf %130, %137 : vector<16x32xf32>
    %139 = arith.truncf %138 : vector<16x32xf32> to vector<16x32xbf16>
    %c1_116 = arith.constant 1 : index
    %c0_117 = arith.constant 0 : index
    %c0_118 = arith.constant 0 : index
    %140 = vector.load %arg12[%c1_116, %c0_117, %c0_118] : memref<2x32x32xbf16, #tpu.memory_space<vmem>>, vector<1x32x32xbf16>
    %141 = vector.shape_cast %140 : vector<1x32x32xbf16> to vector<32x32xbf16>
    %cst_119 = arith.constant dense<0.000000e+00> : vector<16x32xf32>
    %142 = tpu.matmul %139, %141, %cst_119 {dimension_numbers = #tpu.dot_dimension_numbers<[1], [0], [0], [1], [0, 0, 1, 1], [], []>} : vector<16x32xbf16>, vector<32x32xbf16>, vector<16x32xf32> -> vector<16x32xf32>
    %143 = arith.addf %81, %142 : vector<16x32xf32>
    %c1_120 = arith.constant 1 : index
    %c0_121 = arith.constant 0 : index
    %c0_122 = arith.constant 0 : index
    %144 = vector.load %arg13[%c1_120, %c0_121, %c0_122] : memref<2x1x32xf32, #tpu.memory_space<vmem>>, vector<1x1x32xf32>
    %145 = vector.shape_cast %144 : vector<1x1x32xf32> to vector<1x32xf32>
    %146 = vector.broadcast %145 : vector<1x32xf32> to vector<16x32xf32>
    %147 = arith.addf %143, %146 : vector<16x32xf32>
    %148 = arith.mulf %147, %8 : vector<16x32xf32>
    %149 = arith.truncf %148 : vector<16x32xf32> to vector<16x32xbf16>
    %c0_123 = arith.constant 0 : index
    %c0_124 = arith.constant 0 : index
    %150 = vector.load %arg14[%c0_123, %c0_124] : memref<32x4xbf16, #tpu.memory_space<vmem>>, vector<32x4xbf16>
    %cst_125 = arith.constant dense<0.000000e+00> : vector<16x4xf32>
    %151 = tpu.matmul %149, %150, %cst_125 {dimension_numbers = #tpu.dot_dimension_numbers<[1], [0], [0], [1], [0, 0, 1, 1], [], []>} : vector<16x32xbf16>, vector<32x4xbf16>, vector<16x4xf32> -> vector<16x4xf32>
    %c0_126 = arith.constant 0 : index
    %c0_127 = arith.constant 0 : index
    %152 = vector.load %arg15[%c0_126, %c0_127] : memref<1x4xf32, #tpu.memory_space<vmem>>, vector<1x4xf32>
    %153 = vector.broadcast %152 : vector<1x4xf32> to vector<16x4xf32>
    %154 = arith.addf %151, %153 : vector<16x4xf32>
    %155 = arith.mulf %154, %10 : vector<16x4xf32>
    %c0_128 = arith.constant 0 : index
    %c0_129 = arith.constant 0 : index
    %156 = vector.load %arg16[%c0_128, %c0_129] : memref<32x4xbf16, #tpu.memory_space<vmem>>, vector<32x4xbf16>
    %cst_130 = arith.constant dense<0.000000e+00> : vector<16x4xf32>
    %157 = tpu.matmul %149, %156, %cst_130 {dimension_numbers = #tpu.dot_dimension_numbers<[1], [0], [0], [1], [0, 0, 1, 1], [], []>} : vector<16x32xbf16>, vector<32x4xbf16>, vector<16x4xf32> -> vector<16x4xf32>
    %c0_131 = arith.constant 0 : index
    %c0_132 = arith.constant 0 : index
    %158 = vector.load %arg17[%c0_131, %c0_132] : memref<1x4xf32, #tpu.memory_space<vmem>>, vector<1x4xf32>
    %159 = vector.broadcast %158 : vector<1x4xf32> to vector<16x4xf32>
    %160 = arith.addf %157, %159 : vector<16x4xf32>
    %161 = arith.mulf %160, %10 : vector<16x4xf32>
    %c0_133 = arith.constant 0 : index
    %c0_134 = arith.constant 0 : index
    %c0_135 = arith.constant 0 : index
    %162 = vector.load %arg3[%c0_133, %c0_134, %c0_135] : memref<1x16x4xf32, #tpu.memory_space<vmem>>, vector<1x16x4xf32>
    %163 = vector.shape_cast %162 : vector<1x16x4xf32> to vector<16x4xf32>
    %164 = math.exp %161 : vector<16x4xf32>
    %165 = arith.mulf %163, %164 : vector<16x4xf32>
    %166 = arith.addf %155, %165 : vector<16x4xf32>
    %167 = arith.mulf %166, %10 : vector<16x4xf32>
    %c0_136 = arith.constant 0 : index
    %c0_137 = arith.constant 0 : index
    %c0_138 = arith.constant 0 : index
    %c0_139 = arith.constant 0 : index
    %168 = vector.load %arg18[%c0_136, %c0_137, %c0_138, %c0_139] : memref<1x3x16x4xf32, #tpu.memory_space<vmem>>, vector<1x1x16x4xf32>
    %169 = vector.shape_cast %168 : vector<1x1x16x4xf32> to vector<16x4xf32>
    %170 = vector.shape_cast %167 : vector<16x4xf32> to vector<1x1x16x4xf32>
    tpu.vector_store %arg18[%c0_136, %c0_137, %c0_138, %c0_139], %170 {strides = array<i32>} : memref<1x3x16x4xf32, #tpu.memory_space<vmem>>, vector<1x1x16x4xf32>,
    %c0_140 = arith.constant 0 : index
    %c1_141 = arith.constant 1 : index
    %c0_142 = arith.constant 0 : index
    %c0_143 = arith.constant 0 : index
    %171 = vector.load %arg18[%c0_140, %c1_141, %c0_142, %c0_143] : memref<1x3x16x4xf32, #tpu.memory_space<vmem>>, vector<1x1x16x4xf32>
    %172 = vector.shape_cast %171 : vector<1x1x16x4xf32> to vector<16x4xf32>
    %173 = vector.shape_cast %155 : vector<16x4xf32> to vector<1x1x16x4xf32>
    tpu.vector_store %arg18[%c0_140, %c1_141, %c0_142, %c0_143], %173 {strides = array<i32>} : memref<1x3x16x4xf32, #tpu.memory_space<vmem>>, vector<1x1x16x4xf32>,
    %c0_144 = arith.constant 0 : index
    %c2_145 = arith.constant 2 : index
    %c0_146 = arith.constant 0 : index
    %c0_147 = arith.constant 0 : index
    %174 = vector.load %arg18[%c0_144, %c2_145, %c0_146, %c0_147] : memref<1x3x16x4xf32, #tpu.memory_space<vmem>>, vector<1x1x16x4xf32>
    %175 = vector.shape_cast %174 : vector<1x1x16x4xf32> to vector<16x4xf32>
    %176 = vector.shape_cast %161 : vector<16x4xf32> to vector<1x1x16x4xf32>
    tpu.vector_store %arg18[%c0_144, %c2_145, %c0_146, %c0_147], %176 {strides = array<i32>} : memref<1x3x16x4xf32, #tpu.memory_space<vmem>>, vector<1x1x16x4xf32>,
    return
  }
  func.func @transform_0(%arg0: i32, %arg1: memref<2xi32, #tpu.memory_space<smem>>) -> (i32, i32, i32) {
    %c0_i32 = arith.constant 0 : i32
    %c0_i32_0 = arith.constant 0 : i32
    %c0_i32_1 = arith.constant 0 : i32
    return %arg0, %c0_i32, %c0_i32_0 : i32, i32, i32
  }
  func.func @transform_1(%arg0: i32, %arg1: memref<2xi32, #tpu.memory_space<smem>>) -> (i32, i32, i32) {
    %c0_i32 = arith.constant 0 : i32
    %c0_i32_0 = arith.constant 0 : i32
    %c0_i32_1 = arith.constant 0 : i32
    return %arg0, %c0_i32, %c0_i32_0 : i32, i32, i32
  }
  func.func @transform_2(%arg0: i32, %arg1: memref<2xi32, #tpu.memory_space<smem>>) -> (i32, i32) {
    %c0_i32 = arith.constant 0 : i32
    %c0_i32_0 = arith.constant 0 : i32
    %c0_i32_1 = arith.constant 0 : i32
    return %c0_i32, %c0_i32_0 : i32, i32
  }
  func.func @transform_3(%arg0: i32, %arg1: memref<2xi32, #tpu.memory_space<smem>>) -> (i32, i32) {
    %c0_i32 = arith.constant 0 : i32
    %c0_i32_0 = arith.constant 0 : i32
    %c0_i32_1 = arith.constant 0 : i32
    return %c0_i32, %c0_i32_0 : i32, i32
  }
  func.func @transform_4(%arg0: i32, %arg1: memref<2xi32, #tpu.memory_space<smem>>) -> (i32, i32, i32, i32) {
    %c0_i32 = arith.constant 0 : i32
    %c0_i32_0 = arith.constant 0 : i32
    %c0_i32_1 = arith.constant 0 : i32
    %c0_i32_2 = arith.constant 0 : i32
    %c0_i32_3 = arith.constant 0 : i32
    return %c0_i32, %c0_i32_0, %c0_i32_1, %c0_i32_2 : i32, i32, i32, i32
  }
  func.func @transform_5(%arg0: i32, %arg1: memref<2xi32, #tpu.memory_space<smem>>) -> (i32, i32, i32, i32) {
    %c0_i32 = arith.constant 0 : i32
    %c0_i32_0 = arith.constant 0 : i32
    %c0_i32_1 = arith.constant 0 : i32
    %c0_i32_2 = arith.constant 0 : i32
    %c0_i32_3 = arith.constant 0 : i32
    return %c0_i32, %c0_i32_0, %c0_i32_1, %c0_i32_2 : i32, i32, i32, i32
  }
  func.func @transform_6(%arg0: i32, %arg1: memref<2xi32, #tpu.memory_space<smem>>) -> (i32, i32, i32) {
    %c0_i32 = arith.constant 0 : i32
    %c0_i32_0 = arith.constant 0 : i32
    %c0_i32_1 = arith.constant 0 : i32
    %c0_i32_2 = arith.constant 0 : i32
    return %c0_i32, %c0_i32_0, %c0_i32_1 : i32, i32, i32
  }
  func.func @transform_7(%arg0: i32, %arg1: memref<2xi32, #tpu.memory_space<smem>>) -> (i32, i32, i32) {
    %c0_i32 = arith.constant 0 : i32
    %c0_i32_0 = arith.constant 0 : i32
    %c0_i32_1 = arith.constant 0 : i32
    %c0_i32_2 = arith.constant 0 : i32
    return %c0_i32, %c0_i32_0, %c0_i32_1 : i32, i32, i32
  }
  func.func @transform_8(%arg0: i32, %arg1: memref<2xi32, #tpu.memory_space<smem>>) -> (i32, i32, i32) {
    %c0_i32 = arith.constant 0 : i32
    %c0_i32_0 = arith.constant 0 : i32
    %c0_i32_1 = arith.constant 0 : i32
    %c0_i32_2 = arith.constant 0 : i32
    return %c0_i32, %c0_i32_0, %c0_i32_1 : i32, i32, i32
  }
  func.func @transform_9(%arg0: i32, %arg1: memref<2xi32, #tpu.memory_space<smem>>) -> (i32, i32, i32) {
    %c0_i32 = arith.constant 0 : i32
    %c0_i32_0 = arith.constant 0 : i32
    %c0_i32_1 = arith.constant 0 : i32
    %c0_i32_2 = arith.constant 0 : i32
    return %c0_i32, %c0_i32_0, %c0_i32_1 : i32, i32, i32
  }
  func.func @transform_10(%arg0: i32, %arg1: memref<2xi32, #tpu.memory_space<smem>>) -> (i32, i32, i32) {
    %c0_i32 = arith.constant 0 : i32
    %c0_i32_0 = arith.constant 0 : i32
    %c0_i32_1 = arith.constant 0 : i32
    %c0_i32_2 = arith.constant 0 : i32
    return %c0_i32, %c0_i32_0, %c0_i32_1 : i32, i32, i32
  }
  func.func @transform_11(%arg0: i32, %arg1: memref<2xi32, #tpu.memory_space<smem>>) -> (i32, i32, i32) {
    %c0_i32 = arith.constant 0 : i32
    %c0_i32_0 = arith.constant 0 : i32
    %c0_i32_1 = arith.constant 0 : i32
    %c0_i32_2 = arith.constant 0 : i32
    return %c0_i32, %c0_i32_0, %c0_i32_1 : i32, i32, i32
  }
  func.func @transform_12(%arg0: i32, %arg1: memref<2xi32, #tpu.memory_space<smem>>) -> (i32, i32) {
    %c0_i32 = arith.constant 0 : i32
    %c0_i32_0 = arith.constant 0 : i32
    %c0_i32_1 = arith.constant 0 : i32
    return %c0_i32, %c0_i32_0 : i32, i32
  }
  func.func @transform_13(%arg0: i32, %arg1: memref<2xi32, #tpu.memory_space<smem>>) -> (i32, i32) {
    %c0_i32 = arith.constant 0 : i32
    %c0_i32_0 = arith.constant 0 : i32
    %c0_i32_1 = arith.constant 0 : i32
    return %c0_i32, %c0_i32_0 : i32, i32
  }
  func.func @transform_14(%arg0: i32, %arg1: memref<2xi32, #tpu.memory_space<smem>>) -> (i32, i32) {
    %c0_i32 = arith.constant 0 : i32
    %c0_i32_0 = arith.constant 0 : i32
    %c0_i32_1 = arith.constant 0 : i32
    return %c0_i32, %c0_i32_0 : i32, i32
  }
  func.func @transform_15(%arg0: i32, %arg1: memref<2xi32, #tpu.memory_space<smem>>) -> (i32, i32) {
    %c0_i32 = arith.constant 0 : i32
    %c0_i32_0 = arith.constant 0 : i32
    %c0_i32_1 = arith.constant 0 : i32
    return %c0_i32, %c0_i32_0 : i32, i32
  }
  func.func @transform_16(%arg0: i32, %arg1: memref<2xi32, #tpu.memory_space<smem>>) -> (i32, i32, i32, i32) {
    %c0_i32 = arith.constant 0 : i32
    %c0_i32_0 = arith.constant 0 : i32
    %c0_i32_1 = arith.constant 0 : i32
    %c0_i32_2 = arith.constant 0 : i32
    return %arg0, %c0_i32, %c0_i32_0, %c0_i32_1 : i32, i32, i32, i32
  }
}

</mosaic_0001>

<bundles_post_ra>
// kernel: tpu_custom_call.1
= control target key start
LH: loop header
LB: loop body
LE: loop exit
PB: predicated region body
PF: predicated region fallthrough
CT: control target
= control target key end

     0   :  { %s2523_s24 = smov [#allocation4]   ;;  %s2945_s0 = inlined_call_operand.hbm [shape: s32[2], index: 0, kind: input, shape index: {}]   ;;  %s2946_s1 = inlined_call_operand.vmem [shape: f32[2,16,32], index: 1, kind: input, shape index: {}]   ;;  %s2947_s2 = inlined_call_operand.vmem [shape: f32[2,16,4], index: 2, kind: input, shape index: {}]   ;;  %s2948_s3 = inlined_call_operand.vmem [shape: bf16[32,32], index: 3, kind: input, shape index: {}]   ;;  %s2949_s4 = inlined_call_operand.hbm [shape: f32[1,32], index: 4, kind: input, shape index: {}]   ;;  %s2950_s5 = inlined_call_operand.hbm [shape: bf16[2,3,32,32], index: 5, kind: input, shape index: {}]   ;;  %s2951_s6 = inlined_call_operand.hbm [shape: bf16[2,3,32,32], index: 6, kind: input, shape index: {}]   ;;  %s2952_s7 = inlined_call_operand.vmem [shape: f32[2,1,32], index: 7, kind: input, shape index: {}]   ;;  %s2953_s8 = inlined_call_operand.vmem [shape: f32[2,1,32], index: 8, kind: input, shape index: {}]   ;;  %s2954_s9 = inlined_call_operand.hbm [shape: bf16[1,32,32], index: 9, kind: input, shape index: {}]   ;;  %s2955_s10 = inlined_call_operand.vmem [shape: f32[1,1,32], index: 10, kind: input, shape index: {}]   ;;  %s2956_s11 = inlined_call_operand.vmem [shape: bf16[2,32,32], index: 11, kind: input, shape index: {}]   ;;  %s2957_s12 = inlined_call_operand.vmem [shape: f32[2,1,32], index: 12, kind: input, shape index: {}]   ;;  %s2958_s13 = inlined_call_operand.vmem [shape: bf16[32,4], index: 13, kind: input, shape index: {}]   ;;  %s2959_s14 = inlined_call_operand.vmem [shape: f32[1,4], index: 14, kind: input, shape index: {}]   ;;  %s2960_s15 = inlined_call_operand.vmem [shape: bf16[32,4], index: 15, kind: input, shape index: {}]   ;;  %s2961_s16 = inlined_call_operand.vmem [shape: f32[1,4], index: 16, kind: input, shape index: {}]   ;;  %s2962_s17 = inlined_call_operand.vmem [shape: f32[2,3,16,4], index: 17, kind: output, shape index: {}]  }
   0x1   :  { %2963 = sst [smem:[#allocation16_spill]] %s2945_s0 }
   0x2   :  { %2964 = sst [smem:[#allocation17_spill]] %s2946_s1 }
   0x3   :  { %2965 = sst [smem:[#allocation18_spill]] %s2947_s2 }
   0x4   :  { %s2966_s2 = sld [smem:[#allocation16_spill]] }
   0xa   :  { %23 = dma.hbm_to_smem %s2966_s2, 16, %s2523_s24, [#allocation3] }
   0xb   :  { %2505 = dma.done.wait [#allocation3], 16 }
   0xc   :  { %2506 = vsyncadd [#allocation3], 4294967280 }
   0xd   :  { %25 = sfence }
   0xe   :  { %26 = vsyncpa [#allocation6], 0 }
   0xf   :  { %27 = vsyncpa [#allocation8], 0 }
  0x10   :  { %28 = vsyncpa [#allocation11], 0  ;;  %s2625_s27 = smov 0  }
  0x11 LB: > { %s2524_s28 = smov [#allocation7]   ;;  %s2631_s0 = sadd.s32 4294967295, %s2521_s27   ;;  %s2521_s27 = sphi %s2625_s27, %s34_s27  }
  0x12   : > { %s437_s29 = sshll.u32 %s2524_s28, 4  ;;  %p1983_p0 = scmp.ge.s32.totalorder %s2521_s27, 1  ;;  %s438_s29 = int_to_ptr.vmem [resolvable:$true] %s437_s29 }
  0x13   : > { %p411_p1 = scmp.lt.s32.totalorder %s2521_s27, 3  ;;  %p2308_p2 = scmp.eq.s32.totalorder %s2631_s0, 0 }
  0x14   : > { %s2525_s30 = smov [#allocation5]   ;;  %s2526_s1 = smov [#allocation9]  }
  0x15   : > { %p2636_p3 = pnand %p1983_p0, %p411_p1  ;;  %s427_s18 = sshll.u32 %s2525_s30, 4  ;;  %s2642_s18 = int_to_ptr.vmem [resolvable:$true] %s427_s18 }
  0x16   : > { %s450_s20 = sshll.u32 %s2526_s1, 4  ;;  %s2527_s21 = smov [#allocation10]   ;;  %s2650_s20 = int_to_ptr.vmem [resolvable:$true] %s450_s20 }
  0x17   : > { %p2295_p4 = pneg %p2636_p3  ;;  %s2652_s22 = sshll.u32 %s2527_s21, 4  ;;  %s470_s22 = int_to_ptr.vmem [resolvable:$true] %s2652_s22 }
  0x18   : > { %s2408_s23 = scalar_lea.vmem %s438_s29, 1536  ;;  %p2416_p10 = scmp.lt.s32.totalorder %s438_s29, %s438_s29 }
  0x19   : > { %p2646_p5 = pnand %p2308_p2, %p2295_p4  ;;  %p2409_p7 = scmp.ne.s32.totalorder %s438_s29, %s2408_s23 }
  0x1a   : > { %p2417_p11 = scmp.lt.s32.totalorder %s2408_s23, %s2408_s23 }
  0x1b   : > { %p2399_p6 = pneg %p2646_p5 }
  0x1c   : > { %p2418_p12 = por %p2417_p11, %p2416_p10 }
  0x1d   : > { %p2411_p8 = pnand %p2409_p7, %p2399_p6 }
  0x1f   : > { %p2412_p9 = pneg %p2411_p8 }
  0x21   : > { %p2419_p13 = pnand %p2418_p12, %p2412_p9 }
  0x23   : > { %2422 = shalt.err (!%p2419_p13)
}
  0x24   : > { %s2528_s24 = smov 64   ;;  %s2529_s25 = smov 4  }
  0x25   : > { %2301 = dma.hbm_to_vmem [thread:$0]  (!%p2646_p5), %s2950_s5, 1536, %s438_s29, [#allocation8], %s2528_s24, %s2528_s24, %s2529_s25  }
  0x26   : > { %s2434_s30 = scalar_lea.vmem %s2642_s18, 16  ;;  %s2441_s1 = scalar_lea.vmem %s2642_s18, 32 }
  0x27   : > { %p2435_p0 = scmp.ne.s32.totalorder %s2642_s18, %s2434_s30  ;;  %p2442_p7 = scmp.lt.s32.totalorder %s2642_s18, %s2642_s18 }
  0x28   : > { %p2443_p8 = scmp.lt.s32.totalorder %s2441_s1, %s2434_s30 }
  0x29   : > { %p2437_p1 = pnand %p2435_p0, %p2399_p6 }
  0x2a   : > { %p2444_p9 = por %p2443_p8, %p2442_p7 }
  0x2b   : > { %p2438_p4 = pneg %p2437_p1 }
  0x2d   : > { %p2445_p10 = pnand %p2444_p9, %p2438_p4 }
  0x2f   : > { %2448 = shalt.err (!%p2445_p10)
}
  0x30   : > { %2298 = dma.hbm_to_vmem [thread:$0]  (!%p2646_p5), %s2949_s4, 16, %s2642_s18, [#allocation6]  }
  0x31   : > { %s2460_s29 = scalar_lea.vmem %s2650_s20, 1536  ;;  %p2468_p0 = scmp.lt.s32.totalorder %s2650_s20, %s2650_s20 }
  0x32   : > { %p2461_p11 = scmp.ne.s32.totalorder %s2650_s20, %s2460_s29  ;;  %p2469_p1 = scmp.lt.s32.totalorder %s2460_s29, %s2460_s29 }
  0x34   : > { %p2463_p12 = pnand %p2461_p11, %p2399_p6  ;;  %p2470_p4 = por %p2469_p1, %p2468_p0 }
  0x36   : > { %p2464_p13 = pneg %p2463_p12 }
  0x38   : > { %p2471_p7 = pnand %p2470_p4, %p2464_p13 }
  0x3a   : > { %2474 = shalt.err (!%p2471_p7)
}
  0x3b   : > { %2304 = dma.hbm_to_vmem [thread:$0]  (!%p2646_p5), %s2951_s6, 1536, %s2650_s20, [#allocation8], %s2528_s24, %s2528_s24, %s2529_s25  }
  0x3c   : > { %s2486_s28 = scalar_lea.vmem %s470_s22, 256  ;;  %p2494_p11 = scmp.lt.s32.totalorder %s470_s22, %s470_s22 }
  0x3d   : > { %p2487_p8 = scmp.ne.s32.totalorder %s470_s22, %s2486_s28  ;;  %p2495_p12 = scmp.lt.s32.totalorder %s2486_s28, %s2486_s28 }
  0x3f   : > { %p2489_p9 = pnand %p2487_p8, %p2399_p6  ;;  %p2496_p13 = por %p2495_p12, %p2494_p11 }
  0x41   : > { %p2490_p10 = pneg %p2489_p9 }
  0x43   : > { %p2497_p0 = pnand %p2496_p13, %p2490_p10 }
  0x45   : > { %2500 = shalt.err (!%p2497_p0)
}
  0x46   : > { %2307 = dma.hbm_to_vmem [thread:$0]  (!%p2646_p5), %s2954_s9, 256, %s470_s22, [#allocation11], %s2528_s24, %s2528_s24, %s2529_s25  }
  0x47   : > { %522 = sbr.rel (%p2636_p3) target bundleno = 1422 (0x58e), region = 84 }
  0x4c   : > { %2508 = dma.done.wait (%p2308_p2), [#allocation6], 16  }
  0x4d   : > { %2510 = vsyncadd (%p2308_p2), [#allocation6], 4294967280 }
  0x4e   : > { %2512 = dma.done.wait (%p2308_p2), [#allocation8], 3072  }
  0x4f   : > { %2514 = vsyncadd (%p2308_p2), [#allocation8], 4294964224 }
  0x50   : > { %2516 = dma.done.wait (%p2308_p2), [#allocation11], 256  }
  0x51   : > { %2518 = vsyncadd (%p2308_p2), [#allocation11], 4294967040  ;;  %p589_p3 = scmp.lt.s32.totalorder %s2631_s0, 1  ;;  %v2530_v0 = vmov 0.0   ;;  %vm2531_vm0 = vmmov 0   ;;  %s2969_s24 = sld [smem:[#allocation17_spill]]  ;;  %v606_v10 = vlaneseq }
  0x52   : > { %2134 = vmatprep.subr.bf16.mxu0 %v2530_v0  ;;  %2138 = vmatprep.mubr.msk.bf16.mxu0 %vm2531_vm0, %v2530_v0  ;;  %v2333_v1 = vld [vmem:[%s2948_s3 + $0x8] sm:$0xff]   ;;  %v2334_v2 = vld [vmem:[%s2948_s3] sm:$0xff]   ;;  %vm642_vm1 = vcmask 261120   ;;  %vm689_vm2 = vcmask 254976   ;;  %s605_s18 = sld [smem:[#allocation4 + %s2631_s0]]  ;;  %v2339_v25 = vld [vmem:[#allocation9 + $0x18] sm:$0xff]  }
  0x53   : > { %s2728_s2 = scalar_select %p589_p3, %s2631_s0, 1  ;;  %2142 = vmatprep.subr.bf16.mxu1 %v2530_v0  ;;  %2146 = vmatprep.mubr.msk.bf16.mxu1 %vm2531_vm0, %v2530_v0  ;;  %690 = vst.msk [vmem:[#allocation2] sm:$0x3] %vm689_vm2, %v2530_v0  ;;  %691 = vst.msk [vmem:[#allocation2 + $0x12] sm:$0x3] %vm689_vm2, %v2530_v0  ;;  %v2335_v6 = vld [vmem:[#allocation9 + $0x8] sm:$0xff]  }
  0x54   : > { %2135 = vmatpush3.bf16.msra.mxu0 %v2333_v1  ;;  %v2336_v7 = vld [vmem:[#allocation7 + $0x8] sm:$0xff]   ;;  %v2337_v8 = vld [vmem:[#allocation9] sm:$0xff]   ;;  %v607_v11 = vshrl.u32 %v606_v10, 7  ;;  %v2001_v14 = vld [vmem:[#allocation5] ss:$0 sm:$0xff]  ;;  %vm1864_vm5 = vcmask 31744  }
  0x55   : > { %s2078_s19 = sshll.u32 %s2728_s2, 4  ;;  %2136 = vmatprep.subr.bf16.mxu0 %v2530_v0  ;;  %2143 = vmatpush3.bf16.msra.mxu1 %v2336_v7  ;;  %v2338_v9 = vld [vmem:[#allocation7] sm:$0xff]   ;;  %v2340_v28 = vld [vmem:[#allocation7 + $0x18] sm:$0xff]   ;;  %v2341_v30 = vld [vmem:[#allocation9 + $0x10] sm:$0xff]   ;;  %s2278_s20 = smul.u32 48, %s2728_s2 }
  0x56   : > { %2144 = vmatprep.subr.bf16.mxu1 %v2530_v0  ;;  %v608_v13 = vadd.s32 8, %v607_v11  ;;  %v2342_v31 = vld [vmem:[#allocation7 + $0x10] sm:$0xff]   ;;  %v2343_v34 = vld [vmem:[#allocation9 + $0x28] sm:$0xff]   ;;  %v2345_v37 = vld [vmem:[#allocation9 + $0x20] sm:$0xff]   ;;  %s2970_s28 = sld [smem:[#allocation18_spill]] }
  0x57   : > { %s593_s25 = scalar_lea.vmem %s2969_s24, %s2078_s19  ;;  %v2344_v35 = vld [vmem:[#allocation7 + $0x28] sm:$0xff]   ;;  %v2346_v38 = vld [vmem:[#allocation7 + $0x20] sm:$0xff]   ;;  %s2917_s26 = scalar_lea.vmem %s2962_s17, %s2278_s20 }
  0x58   : > { %v616_v3 = vld [vmem:[%s593_s25] sm:$0xff]  ;;  %v617_v4 = vld [vmem:[%s593_s25 + $0x8] sm:$0xff]  ;;  %2137 = vmatpush3.bf16.msra.mxu0 %v2334_v2  ;;  %v609_v12 = vstv %s605_s18 }
  0x59   : > { %v618_v5 = vpack.c.bf16 %v617_v4, %v616_v3  ;;  %2150 = vmatprep.subr.bf16.mxu0 %v2530_v0  ;;  %2145 = vmatpush3.bf16.msra.mxu1 %v2338_v9  ;;  %vm610_vm3 = vcmp.lt.s32.totalorder %v607_v11, %v609_v12  ;;  %vm611_vm4 = vcmp.lt.s32.totalorder %v608_v13, %v609_v12  ;;  %v2347_v42 = vld [vmem:[#allocation10 + $0x8] sm:$0xff]   ;;  %v2349_v44 = vld [vmem:[#allocation10] sm:$0xff]  }
  0x5a   : > { %2158 = vmatprep.subr.bf16.mxu1 %v2530_v0  ;;  %v2758_v15 = vsel %vm610_vm3, 1.0, %v2530_v0  ;;  %v2764_v20 = vsel %vm611_vm4, 1.0, %v2530_v0  ;;  %v2348_v43 = vld [vmem:[%s2956_s11 + $0x8] sm:$0xff]   ;;  %v2350_v45 = vld [vmem:[%s2956_s11] sm:$0xff]  }
  0x5b   : > { %2139 = vmatmul.mubr.msk.bf16.vlgmr.msra.gmra.mxu0 %vm642_vm1, %v618_v5  ;;  %v2006_v56 = vld [vmem:[%s2953_s8] ss:$0 sm:$0xff] }
  0x5c   : > { %2154 = vmatprep.mubr.msk.bf16.mxu0 %vm2531_vm0, %v2530_v0  ;;  %2151 = vmatpush3.bf16.msra.mxu0 %v2335_v6  ;;  %v2005_v4 = vld [vmem:[%s2952_s7] ss:$0 sm:$0xff]  ;;  %s598_s30 = scalar_lea.vmem %s2970_s28, %s2078_s19 }
  0x5d   : > { %2152 = vmatprep.subr.bf16.mxu0 %v2530_v0 }
  0x60   : > { %2153 = vmatpush3.bf16.msra.mxu0 %v2337_v8 }
  0x61   : > { %2166 = vmatprep.subr.bf16.mxu0 %v2530_v0 }
 0x11b   : > { %v680_v16 = vpop.f32.mrf.mxu0 }
 0x11c   : > { %v681_v17 = vadd.f32 %v2001_v14, %v680_v16 }
 0x11d   : > { %v2140_v18 = vpop.f32.mrf.mxu0 }
 0x11e   : > { %v2761_v19 = vmul.f32 %v2758_v15, %v681_v17 }
 0x11f   : > { %v683_v21 = vpop.f32.mrf.mxu0 }
 0x120   : > { %692 = vst.msk [vmem:[#allocation2 + $0x2] sm:$0xff] %vm642_vm1, %v2761_v19  ;;  %v684_v22 = vadd.f32 %v2001_v14, %v683_v21 }
 0x121   : > { %v2141_v23 = vpop.f32.mrf.mxu0 }
 0x122   : > { %v2769_v24 = vmul.f32 %v2764_v20, %v684_v22 }
 0x124   : > { %693 = vst.msk [vmem:[#allocation2 + $0xa] sm:$0xff] %vm642_vm1, %v2769_v24 }
 0x127   : > { %v708_v26 = vld [vmem:[#allocation2 + $0x1] sm:$0xff] }
 0x128   : > { %v832_v33 = vld [vmem:[#allocation2 + $0x2] sm:$0xff] }
 0x12b   : > { %v709_v27 = vld [vmem:[#allocation2 + $0x9] sm:$0xff] }
 0x12c   : > { %v710_v29 = vpack.c.bf16 %v709_v27, %v708_v26  ;;  %v833_v32 = vld [vmem:[#allocation2 + $0xa] sm:$0xff] }
 0x12d   : > { %v834_v36 = vpack.c.bf16 %v833_v32, %v832_v33  ;;  %v958_v39 = vld [vmem:[#allocation2 + $0x3] sm:$0xff]  ;;  %v959_v40 = vld [vmem:[#allocation2 + $0xb] sm:$0xff] }
 0x12e   : > { %2147 = vmatmul.mubr.msk.bf16.vlgmr.msra.gmra.mxu1 %vm642_vm1, %v710_v29  ;;  %2155 = vmatmul.mubr.msk.bf16.vlgmr.msra.gmra.mxu0 %vm642_vm1, %v710_v29  ;;  %v960_v41 = vpack.c.bf16 %v959_v40, %v958_v39  ;;  %v2352_v39 = vld [vmem:[#allocation7 + $0x38] sm:$0xff]   ;;  %v2353_v40 = vld [vmem:[#allocation9 + $0x30] sm:$0xff]  }
 0x12f   : > { %2167 = vmatpush3.bf16.msra.mxu0 %v2339_v25  ;;  %2159 = vmatpush3.bf16.msra.mxu1 %v2340_v28 }
 0x130   : > { %2168 = vmatprep.subr.bf16.mxu0 %v2530_v0  ;;  %2160 = vmatprep.subr.bf16.mxu1 %v2530_v0 }
 0x131   : > { %2162 = vmatprep.mubr.msk.bf16.mxu1 %vm2531_vm0, %v2530_v0  ;;  %2170 = vmatprep.mubr.msk.bf16.mxu0 %vm2531_vm0, %v2530_v0 }
 0x133   : > { %2169 = vmatpush3.bf16.msra.mxu0 %v2341_v30  ;;  %2161 = vmatpush3.bf16.msra.mxu1 %v2342_v31 }
 0x134   : > { %2182 = vmatprep.subr.bf16.mxu0 %v2530_v0  ;;  %2174 = vmatprep.subr.bf16.mxu1 %v2530_v0 }
 0x136   : > { %2163 = vmatmul.mubr.msk.bf16.vlgmr.msra.gmra.mxu1 %vm642_vm1, %v834_v36  ;;  %2171 = vmatmul.mubr.msk.bf16.vlgmr.msra.gmra.mxu0 %vm642_vm1, %v834_v36 }
 0x137   : > { %2183 = vmatpush3.bf16.msra.mxu0 %v2343_v34  ;;  %2175 = vmatpush3.bf16.msra.mxu1 %v2344_v35 }
 0x138   : > { %2184 = vmatprep.subr.bf16.mxu0 %v2530_v0  ;;  %2176 = vmatprep.subr.bf16.mxu1 %v2530_v0 }
 0x139   : > { %2178 = vmatprep.mubr.msk.bf16.mxu1 %vm2531_vm0, %v2530_v0  ;;  %2186 = vmatprep.mubr.msk.bf16.mxu0 %vm2531_vm0, %v2530_v0 }
 0x13b   : > { %2185 = vmatpush3.bf16.msra.mxu0 %v2345_v37  ;;  %2177 = vmatpush3.bf16.msra.mxu1 %v2346_v38  ;;  %v2351_v38 = vld [vmem:[#allocation9 + $0x38] sm:$0xff]  }
 0x13c   : > { %2198 = vmatprep.subr.bf16.mxu0 %v2530_v0  ;;  %2190 = vmatprep.subr.bf16.mxu1 %v2530_v0 }
 0x13e   : > { %2179 = vmatmul.mubr.msk.bf16.vlgmr.msra.gmra.mxu1 %vm642_vm1, %v960_v41  ;;  %2187 = vmatmul.mubr.msk.bf16.vlgmr.msra.gmra.mxu0 %vm642_vm1, %v960_v41  ;;  %v2354_v41 = vld [vmem:[#allocation7 + $0x30] sm:$0xff]  }
 0x13f   : > { %2194 = vmatprep.mubr.msk.bf16.mxu1 %vm2531_vm0, %v2530_v0  ;;  %2202 = vmatprep.mubr.msk.bf16.mxu0 %vm2531_vm0, %v2530_v0 }
 0x140   : > { %2199 = vmatpush3.bf16.msra.mxu0 %v2347_v42  ;;  %2191 = vmatpush3.bf16.msra.mxu1 %v2348_v43  ;;  %v2029_v42 = vld [vmem:[%s2955_s10] ss:$0 sm:$0xff] }
 0x141   : > { %2200 = vmatprep.subr.bf16.mxu0 %v2530_v0  ;;  %2192 = vmatprep.subr.bf16.mxu1 %v2530_v0 }
 0x144   : > { %2201 = vmatpush3.bf16.msra.mxu0 %v2349_v44  ;;  %2193 = vmatpush3.bf16.msra.mxu1 %v2350_v45 }
 0x145   : > { %2214 = vmatprep.subr.bf16.mxu0 %v2530_v0  ;;  %2206 = vmatprep.subr.bf16.mxu1 %v2530_v0 }
 0x1ee   : > { %v764_v46 = vpop.f32.mrf.mxu1  ;;  %v823_v47 = vpop.f32.mrf.mxu0 }
 0x1ef   : > { %v830_v61 = vadd.f32 %v2006_v56, %v823_v47  ;;  %v771_v11 = vadd.f32 %v2005_v4, %v764_v46 }
 0x1f0   : > { %v2148_v48 = vpop.f32.mrf.mxu1  ;;  %v2156_v49 = vpop.f32.mrf.mxu0 }
 0x1f2   : > { %v767_v50 = vpop.f32.mrf.mxu1  ;;  %v826_v51 = vpop.f32.mrf.mxu0 }
 0x1f3   : > { %v831_v5 = vadd.f32 %v2006_v56, %v826_v51  ;;  %v772_v14 = vadd.f32 %v2005_v4, %v767_v50  ;;  %v2361_v4 = vld [vmem:[#allocation9 + $0x50] sm:$0xff]  }
 0x1f4   : > { %v2149_v52 = vpop.f32.mrf.mxu1  ;;  %v2157_v53 = vpop.f32.mrf.mxu0 }
 0x1f6   : > { %v889_v54 = vpop.f32.mrf.mxu1  ;;  %v949_v55 = vpop.f32.mrf.mxu0 }
 0x1f7   : > { %v956_v1 = vadd.f32 %v949_v55, %v830_v61  ;;  %v896_v17 = vadd.f32 %v889_v54, %v771_v11  ;;  %v2357_v61 = vld [vmem:[#allocation9 + $0x40] sm:$0xff]  }
 0x1f8   : > { %v2164_v57 = vpop.f32.mrf.mxu1  ;;  %v2172_v58 = vpop.f32.mrf.mxu0 }
 0x1f9   : > { %v2355_v57 = vld [vmem:[#allocation9 + $0x48] sm:$0xff]  }
 0x1fa   : > { %v892_v59 = vpop.f32.mrf.mxu1  ;;  %v952_v60 = vpop.f32.mrf.mxu0 }
 0x1fb   : > { %v957_v9 = vadd.f32 %v952_v60, %v831_v5  ;;  %v897_v22 = vadd.f32 %v892_v59, %v772_v14  ;;  %v2362_v5 = vld [vmem:[#allocation7 + $0x50] sm:$0xff]  }
 0x1fc   : > { %v2165_v62 = vpop.f32.mrf.mxu1  ;;  %v2173_v63 = vpop.f32.mrf.mxu0 }
 0x1fd   : > { %v2358_v62 = vld [vmem:[#allocation7 + $0x40] sm:$0xff]  }
 0x1fe   : > { %v1015_v2 = vpop.f32.mrf.mxu1  ;;  %v1075_v3 = vpop.f32.mrf.mxu0 }
 0x1ff   : > { %v1082_v6 = vadd.f32 %v1075_v3, %v956_v1  ;;  %v1022_v25 = vadd.f32 %v1015_v2, %v896_v17  ;;  %v2359_v1 = vld [vmem:[#allocation9 + $0x58] sm:$0xff]  }
 0x200   : > { %v2180_v7 = vpop.f32.mrf.mxu1  ;;  %v2188_v8 = vpop.f32.mrf.mxu0  ;;  %v2360_v2 = vld [vmem:[#allocation7 + $0x58] sm:$0xff]  }
 0x201   : > { %v1086_v10 = vmul.f32 0.5, %v1082_v6 }
 0x202   : > { %v1018_v12 = vpop.f32.mrf.mxu1  ;;  %v1078_v13 = vpop.f32.mrf.mxu0 }
 0x203   : > { %2369 = vtanh.f32 %v1086_v10  ;;  %v1083_v16 = vadd.f32 %v1078_v13, %v957_v9  ;;  %v1023_v26 = vadd.f32 %v1018_v12, %v897_v22  ;;  %v2363_v9 = vld [vmem:[%s2956_s11 + $0x18] sm:$0xff]   ;;  %v2364_v10 = vld [vmem:[%s2956_s11 + $0x10] sm:$0xff]  }
 0x204   : > { %v2181_v18 = vpop.f32.mrf.mxu1  ;;  %v2189_v21 = vpop.f32.mrf.mxu0 }
 0x205   : > { %v1087_v23 = vmul.f32 0.5, %v1083_v16 }
 0x207   : > { %2371 = vtanh.f32 %v1087_v23 }
 0x208   : > { %2373 = vtanh.f32 %v1022_v25  ;;  %v2036_v25 = vld [vmem:[%s2953_s8 + $0x1] ss:$0 sm:$0xff] }
 0x209   : > { %2375 = vtanh.f32 %v1023_v26 }
 0x210   : > { %v2370_v27 = vpop.eup %2369 }
 0x211   : > { %v1090_v28 = vadd.f32 1.0, %v2370_v27 }
 0x213   : > { %v1092_v30 = vmul.f32 0.5, %v1090_v28 }
 0x214   : > { %v2372_v29 = vpop.eup %2371 }
 0x215   : > { %v1091_v31 = vadd.f32 1.0, %v2372_v29  ;;  %v2374_v32 = vpop.eup %2373 }
 0x216   : > { %v2376_v34 = vpop.eup %2375  ;;  %v1094_v35 = vmul.f32 %v2374_v32, %v1092_v30 }
 0x217   : > { %v1093_v33 = vmul.f32 0.5, %v1091_v31 }
 0x219   : > { %v1095_v36 = vmul.f32 %v2376_v34, %v1093_v33 }
 0x21b   : > { %v1096_v37 = vpack.c.bf16 %v1095_v36, %v1094_v35  ;;  %v2034_v36 = vld [vmem:[%s2952_s7 + $0x1] ss:$0 sm:$0xff] }
 0x21d   : > { %2195 = vmatmul.mubr.msk.bf16.vlgmr.msra.gmra.mxu1 %vm642_vm1, %v1096_v37  ;;  %2203 = vmatmul.mubr.msk.bf16.vlgmr.msra.gmra.mxu0 %vm642_vm1, %v1096_v37 }
 0x21e   : > { %2210 = vmatprep.mubr.msk.bf16.mxu1 %vm2531_vm0, %v2530_v0  ;;  %2218 = vmatprep.mubr.msk.bf16.mxu0 %vm2531_vm0, %v2530_v0 }
 0x21f   : > { %2215 = vmatpush3.bf16.msra.mxu0 %v2351_v38  ;;  %2207 = vmatpush3.bf16.msra.mxu1 %v2352_v39 }
 0x220   : > { %2216 = vmatprep.subr.bf16.mxu0 %v2530_v0  ;;  %2208 = vmatprep.subr.bf16.mxu1 %v2530_v0 }
 0x223   : > { %2217 = vmatpush3.bf16.msra.mxu0 %v2353_v40  ;;  %2209 = vmatpush3.bf16.msra.mxu1 %v2354_v41 }
 0x224   : > { %2230 = vmatprep.subr.bf16.mxu0 %v2530_v0  ;;  %2222 = vmatprep.subr.bf16.mxu1 %v2530_v0 }
 0x2dd   : > { %v2828_v43 = vpop.f32.mrf.mxu1  ;;  %v1221_v44 = vpop.f32.mrf.mxu0 }
 0x2de   : > { %v1222_v45 = vadd.f32 %v2029_v42, %v1221_v44 }
 0x2df   : > { %v2196_v46 = vpop.f32.mrf.mxu1  ;;  %v2204_v47 = vpop.f32.mrf.mxu0 }
 0x2e0   : > { %v1228_v48 = vadd.f32 %v1222_v45, %v2761_v19  ;;  %v2356_v19 = vld [vmem:[#allocation7 + $0x48] sm:$0xff]  }
 0x2e1   : > { %v2831_v49 = vpop.f32.mrf.mxu1  ;;  %v1224_v50 = vpop.f32.mrf.mxu0 }
 0x2e2   : > { %v1230_v51 = vmul.f32 %v2758_v15, %v1228_v48  ;;  %v1225_v52 = vadd.f32 %v2029_v42, %v1224_v50 }
 0x2e3   : > { %v2197_v53 = vpop.f32.mrf.mxu1  ;;  %v2205_v54 = vpop.f32.mrf.mxu0 }
 0x2e4   : > { %1232 = vst.msk [vmem:[#allocation2 + $0x2] sm:$0xff] %vm642_vm1, %v1230_v51  ;;  %v1229_v55 = vadd.f32 %v1225_v52, %v2769_v24 }
 0x2e6   : > { %v1231_v56 = vmul.f32 %v2764_v20, %v1229_v55 }
 0x2e8   : > { %1233 = vst.msk [vmem:[#allocation2 + $0xa] sm:$0xff] %vm642_vm1, %v1231_v56 }
 0x2eb   : > { %v1250_v58 = vld [vmem:[#allocation2] sm:$0xff] }
 0x2ec   : > { %v1376_v63 = vld [vmem:[#allocation2 + $0x2] sm:$0xff] }
 0x2ef   : > { %v1251_v59 = vld [vmem:[#allocation2 + $0x8] sm:$0xff] }
 0x2f0   : > { %v1252_v60 = vpack.c.bf16 %v1251_v59, %v1250_v58  ;;  %v1377_v24 = vld [vmem:[#allocation2 + $0xa] sm:$0xff] }
 0x2f1   : > { %v1378_v3 = vpack.c.bf16 %v1377_v24, %v1376_v63  ;;  %v1502_v6 = vld [vmem:[#allocation2 + $0x4] sm:$0xff]  ;;  %v1503_v7 = vld [vmem:[#allocation2 + $0xc] sm:$0xff] }
 0x2f2   : > { %2211 = vmatmul.mubr.msk.bf16.vlgmr.msra.gmra.mxu1 %vm642_vm1, %v1252_v60  ;;  %2219 = vmatmul.mubr.msk.bf16.vlgmr.msra.gmra.mxu0 %vm642_vm1, %v1252_v60  ;;  %v1504_v8 = vpack.c.bf16 %v1503_v7, %v1502_v6  ;;  %v2368_v6 = vld [vmem:[%s2958_s13] sm:$0xff]  }
 0x2f3   : > { %2231 = vmatpush3.bf16.msra.mxu0 %v2355_v57  ;;  %2223 = vmatpush3.bf16.msra.mxu1 %v2356_v19  ;;  %v2025_v7 = vld [vmem:[%s2957_s12] ss:$0 sm:$0xff] }
 0x2f4   : > { %2232 = vmatprep.subr.bf16.mxu0 %v2530_v0  ;;  %2224 = vmatprep.subr.bf16.mxu1 %v2530_v0 }
 0x2f5   : > { %2226 = vmatprep.mubr.msk.bf16.mxu1 %vm2531_vm0, %v2530_v0  ;;  %2234 = vmatprep.mubr.msk.bf16.mxu0 %vm2531_vm0, %v2530_v0 }
 0x2f7   : > { %2233 = vmatpush3.bf16.msra.mxu0 %v2357_v61  ;;  %2225 = vmatpush3.bf16.msra.mxu1 %v2358_v62 }
 0x2f8   : > { %2246 = vmatprep.subr.bf16.mxu0 %v2530_v0  ;;  %2238 = vmatprep.subr.bf16.mxu1 %v2530_v0 }
 0x2fa   : > { %2227 = vmatmul.mubr.msk.bf16.vlgmr.msra.gmra.mxu1 %vm642_vm1, %v1378_v3  ;;  %2235 = vmatmul.mubr.msk.bf16.vlgmr.msra.gmra.mxu0 %vm642_vm1, %v1378_v3  ;;  %v2365_v3 = vld [vmem:[%s2960_s15 + $0x8] sm:$0xff]  }
 0x2fb   : > { %2247 = vmatpush3.bf16.msra.mxu0 %v2359_v1  ;;  %2239 = vmatpush3.bf16.msra.mxu1 %v2360_v2 }
 0x2fc   : > { %2248 = vmatprep.subr.bf16.mxu0 %v2530_v0  ;;  %2240 = vmatprep.subr.bf16.mxu1 %v2530_v0 }
 0x2fd   : > { %2242 = vmatprep.mubr.msk.bf16.mxu1 %vm2531_vm0, %v2530_v0  ;;  %2250 = vmatprep.mubr.msk.bf16.mxu0 %vm2531_vm0, %v2530_v0 }
 0x2ff   : > { %2249 = vmatpush3.bf16.msra.mxu0 %v2361_v4  ;;  %2241 = vmatpush3.bf16.msra.mxu1 %v2362_v5  ;;  %v2366_v4 = vld [vmem:[%s2958_s13 + $0x8] sm:$0xff]   ;;  %v2367_v5 = vld [vmem:[%s2960_s15] sm:$0xff]  }
 0x300   : > { %2254 = vmatprep.subr.bf16.mxu1 %v2530_v0  ;;  %2262 = vmatprep.subr.bf16.mxu0 %v2530_v0 }
 0x302   : > { %2243 = vmatmul.mubr.msk.bf16.vlgmr.msra.gmra.mxu1 %vm642_vm1, %v1504_v8  ;;  %2251 = vmatmul.mubr.msk.bf16.vlgmr.msra.gmra.mxu0 %vm642_vm1, %v1504_v8  ;;  %v1158_v8 = vadd.f32 %v2025_v7, %v2828_v43 }
 0x303   : > { %2258 = vmatprep.mubr.msk.bf16.mxu1 %vm2531_vm0, %v2530_v0  ;;  %2266 = vmatprep.mubr.msk.bf16.mxu0 %vm2531_vm0, %v2530_v0 }
 0x304   : > { %2255 = vmatpush3.bf16.msra.mxu1 %v2363_v9  ;;  %2263 = vmatpush3.bf16.msra.mxu0 %v2366_v4 }
 0x305   : > { %2256 = vmatprep.subr.bf16.mxu1 %v2530_v0  ;;  %2264 = vmatprep.subr.bf16.mxu0 %v2530_v0 }
 0x308   : > { %2257 = vmatpush3.bf16.msra.mxu1 %v2364_v10  ;;  %2265 = vmatpush3.bf16.msra.mxu0 %v2368_v6 }
 0x309   : > { %2270 = vmatprep.subr.bf16.mxu1 %v2530_v0 }
 0x3b2   : > { %v1307_v11 = vpop.f32.mrf.mxu1  ;;  %v1367_v12 = vpop.f32.mrf.mxu0 }
 0x3b3   : > { %v1374_v30 = vadd.f32 %v2036_v25, %v1367_v12  ;;  %v1314_v44 = vadd.f32 %v2034_v36, %v1307_v11  ;;  %v1161_v12 = vadd.f32 %v2025_v7, %v2831_v49  ;;  %v2068_v49 = vld [vmem:[%s2961_s16] ss:$0 sm:$0xff] }
 0x3b4   : > { %v2212_v13 = vpop.f32.mrf.mxu1  ;;  %v2220_v14 = vpop.f32.mrf.mxu0 }
 0x3b6   : > { %v1310_v16 = vpop.f32.mrf.mxu1  ;;  %v1370_v17 = vpop.f32.mrf.mxu0 }
 0x3b7   : > { %v1375_v37 = vadd.f32 %v2036_v25, %v1370_v17  ;;  %v1315_v47 = vadd.f32 %v2034_v36, %v1310_v16 }
 0x3b8   : > { %v2213_v18 = vpop.f32.mrf.mxu1  ;;  %v2221_v21 = vpop.f32.mrf.mxu0 }
 0x3ba   : > { %v1433_v22 = vpop.f32.mrf.mxu1  ;;  %v1493_v23 = vpop.f32.mrf.mxu0 }
 0x3bb   : > { %v1500_v33 = vadd.f32 %v1493_v23, %v1374_v30  ;;  %v1440_v50 = vadd.f32 %v1433_v22, %v1314_v44  ;;  %v2064_v23 = vld [vmem:[%s2959_s14] ss:$0 sm:$0xff] }
 0x3bc   : > { %v2228_v26 = vpop.f32.mrf.mxu1  ;;  %v2236_v27 = vpop.f32.mrf.mxu0  ;;  %v1852_v44 = vld [vmem:[%s598_s30] sm:$0xff] }
 0x3be   : > { %v1436_v28 = vpop.f32.mrf.mxu1  ;;  %v1496_v29 = vpop.f32.mrf.mxu0 }
 0x3bf   : > { %v1501_v41 = vadd.f32 %v1496_v29, %v1375_v37  ;;  %v1441_v53 = vadd.f32 %v1436_v28, %v1315_v47  ;;  %v1853_v47 = vld [vmem:[%s598_s30 + $0x8] sm:$0xff] }
 0x3c0   : > { %v2229_v31 = vpop.f32.mrf.mxu1  ;;  %v2237_v32 = vpop.f32.mrf.mxu0 }
 0x3c2   : > { %v1559_v34 = vpop.f32.mrf.mxu1  ;;  %v1619_v35 = vpop.f32.mrf.mxu0 }
 0x3c3   : > { %v1626_v38 = vadd.f32 %v1619_v35, %v1500_v33  ;;  %v1566_v55 = vadd.f32 %v1559_v34, %v1440_v50 }
 0x3c4   : > { %v2244_v39 = vpop.f32.mrf.mxu1  ;;  %v2252_v40 = vpop.f32.mrf.mxu0 }
 0x3c5   : > { %v1630_v42 = vmul.f32 0.5, %v1626_v38 }
 0x3c6   : > { %v1562_v45 = vpop.f32.mrf.mxu1  ;;  %v1622_v46 = vpop.f32.mrf.mxu0 }
 0x3c7   : > { %2377 = vtanh.f32 %v1630_v42  ;;  %v1627_v48 = vadd.f32 %v1622_v46, %v1501_v41  ;;  %v1567_v56 = vadd.f32 %v1562_v45, %v1441_v53 }
 0x3c8   : > { %v2245_v51 = vpop.f32.mrf.mxu1  ;;  %v2253_v52 = vpop.f32.mrf.mxu0 }
 0x3c9   : > { %v1631_v54 = vmul.f32 0.5, %v1627_v48 }
 0x3cb   : > { %2379 = vtanh.f32 %v1631_v54 }
 0x3cc   : > { %2381 = vtanh.f32 %v1566_v55 }
 0x3cd   : > { %2383 = vtanh.f32 %v1567_v56 }
 0x3d4   : > { %v2378_v57 = vpop.eup %2377 }
 0x3d5   : > { %v1634_v58 = vadd.f32 1.0, %v2378_v57 }
 0x3d7   : > { %v1636_v19 = vmul.f32 0.5, %v1634_v58 }
 0x3d8   : > { %v2380_v59 = vpop.eup %2379 }
 0x3d9   : > { %v1635_v60 = vadd.f32 1.0, %v2380_v59  ;;  %v2382_v61 = vpop.eup %2381 }
 0x3da   : > { %v2384_v24 = vpop.eup %2383  ;;  %v1638_v63 = vmul.f32 %v2382_v61, %v1636_v19 }
 0x3db   : > { %v1637_v62 = vmul.f32 0.5, %v1635_v60 }
 0x3dd   : > { %v1639_v1 = vmul.f32 %v2384_v24, %v1637_v62 }
 0x3df   : > { %v1640_v2 = vpack.c.bf16 %v1639_v1, %v1638_v63 }
 0x3e1   : > { %2259 = vmatmul.mubr.msk.bf16.vlgmr.msra.gmra.mxu1 %vm642_vm1, %v1640_v2 }
 0x3e2   : > { %2274 = vmatprep.mubr.msk.bf16.mxu1 %vm2531_vm0, %v2530_v0  ;;  %2271 = vmatpush3.bf16.msra.mxu1 %v2365_v3 }
 0x3e3   : > { %2272 = vmatprep.subr.bf16.mxu1 %v2530_v0  ;;  %v2063_v0 = vld [vmem:[%s2957_s12 + $0x1] ss:$0 sm:$0xff] }
 0x3e6   : > { %2273 = vmatpush3.bf16.msra.mxu1 %v2367_v5 }
 0x4a1   : > { %v1695_v9 = vpop.f32.mrf.mxu1 }
 0x4a2   : > { %v1702_v10 = vadd.f32 %v1695_v9, %v1158_v8 }
 0x4a3   : > { %v2260_v11 = vpop.f32.mrf.mxu1 }
 0x4a4   : > { %v1712_v14 = vadd.f32 %v2063_v0, %v1702_v10 }
 0x4a5   : > { %v1698_v13 = vpop.f32.mrf.mxu1 }
 0x4a6   : > { %v1703_v16 = vadd.f32 %v1698_v13, %v1161_v12  ;;  %v1714_v21 = vmul.f32 %v2758_v15, %v1712_v14 }
 0x4a7   : > { %v2261_v17 = vpop.f32.mrf.mxu1 }
 0x4a8   : > { %v1713_v18 = vadd.f32 %v2063_v0, %v1703_v16 }
 0x4aa   : > { %v1715_v22 = vmul.f32 %v2764_v20, %v1713_v18 }
 0x4ac   : > { %v1716_v43 = vpack.c.bf16 %v1715_v22, %v1714_v21 }
 0x4ae   : > { %2267 = vmatmul.mubr.msk.bf16.vlgmr.msra.gmra.mxu0 %vm642_vm1, %v1716_v43  ;;  %2275 = vmatmul.mubr.msk.bf16.vlgmr.msra.gmra.mxu1 %vm642_vm1, %v1716_v43 }
 0x56e   : > { %v1777_v25 = vpop.f32.mrf.mxu0  ;;  %v1843_v26 = vpop.f32.mrf.mxu1 }
 0x56f   : > { %v1778_v27 = vadd.f32 %v2064_v23, %v1777_v25  ;;  %v1844_v28 = vadd.f32 %v2068_v49, %v1843_v26 }
 0x570   : > { %v2268_v29 = vpop.f32.mrf.mxu0  ;;  %v2276_v30 = vpop.f32.mrf.mxu1 }
 0x571   : > { %v1784_v31 = vmul.f32 %v2758_v15, %v1778_v27  ;;  %v1850_v32 = vmul.f32 %v2758_v15, %v1844_v28 }
 0x572   : > { %v1780_v33 = vpop.f32.mrf.mxu0  ;;  %v1846_v34 = vpop.f32.mrf.mxu1 }
 0x573   : > { %2072 = vst.msk [vmem:[%s2917_s26 + $0x10] sm:$0xff] %vm1864_vm5, %v1784_v31  ;;  %v1854_v35 = vmul.f32 1.442695, %v1850_v32  ;;  %2074 = vst.msk [vmem:[%s2917_s26 + $0x20] sm:$0xff] %vm1864_vm5, %v1850_v32  ;;  %v1781_v36 = vadd.f32 %v2064_v23, %v1780_v33  ;;  %v1847_v37 = vadd.f32 %v2068_v49, %v1846_v34 }
 0x574   : > { %v2269_v38 = vpop.f32.mrf.mxu0  ;;  %v2277_v39 = vpop.f32.mrf.mxu1 }
 0x575   : > { %2385 = vpow2.f32 %v1854_v35  ;;  %v1785_v40 = vmul.f32 %v2764_v20, %v1781_v36  ;;  %v1851_v41 = vmul.f32 %v2764_v20, %v1847_v37 }
 0x577   : > { %2073 = vst.msk [vmem:[%s2917_s26 + $0x18] sm:$0xff] %vm1864_vm5, %v1785_v40  ;;  %v1856_v42 = vmul.f32 1.442695, %v1851_v41  ;;  %2075 = vst.msk [vmem:[%s2917_s26 + $0x28] sm:$0xff] %vm1864_vm5, %v1851_v41 }
 0x579   : > { %2387 = vpow2.f32 %v1856_v42 }
 0x582   : > { %v2386_v45 = vpop.eup %2385 }
 0x583   : > { %v1858_v46 = vmul.f32 %v2386_v45, %v1852_v44 }
 0x585   : > { %v1860_v48 = vadd.f32 %v1858_v46, %v1784_v31 }
 0x586   : > { %v2388_v50 = vpop.eup %2387 }
 0x587   : > { %v1862_v51 = vmul.f32 %v2758_v15, %v1860_v48  ;;  %v1859_v52 = vmul.f32 %v2388_v50, %v1853_v47 }
 0x589   : > { %1865 = vst.msk [vmem:[%s2917_s26] sm:$0xff] %vm1864_vm5, %v1862_v51  ;;  %v1861_v53 = vadd.f32 %v1859_v52, %v1785_v40 }
 0x58b   : > { %v1863_v54 = vmul.f32 %v2764_v20, %v1861_v53 }
 0x58d   : > { %1866 = vst.msk [vmem:[%s2917_s26 + $0x8] sm:$0xff] %vm1864_vm5, %v1863_v54 }
 0x58e PF: > { %s34_s27 = sadd.s32 1, %s2521_s27  }
 0x58f   : > { %p31_p2 = scmp.ge.s32.totalorder %s34_s27, 4  }
 0x591   :  { %33 = sbr.rel (!%p31_p2) target bundleno = 17 (0x11), region = 150 }
 0x596   :  { %1894 = vsyncpa [#allocation6], 1 }
 0x597   :  { %1896 = vsyncpa [#allocation6 + $0x1], 1 }
 0x598   :  { %1897 = vsyncpa [#allocation8], 1 }
 0x599   :  { %1898 = vsyncpa [#allocation11], 1 }

// kernel: tpu_custom_call.1
= control target key start
LH: loop header
LB: loop body
LE: loop exit
PB: predicated region body
PF: predicated region fallthrough
CT: control target
= control target key end

     0   :  { %s2523_s24 = smov [#allocation4]   ;;  %s2945_s0 = inlined_call_operand.hbm [shape: s32[2], index: 0, kind: input, shape index: {}]   ;;  %s2946_s1 = inlined_call_operand.vmem [shape: f32[2,16,32], index: 1, kind: input, shape index: {}]   ;;  %s2947_s2 = inlined_call_operand.vmem [shape: f32[2,16,4], index: 2, kind: input, shape index: {}]   ;;  %s2948_s3 = inlined_call_operand.vmem [shape: bf16[32,32], index: 3, kind: input, shape index: {}]   ;;  %s2949_s4 = inlined_call_operand.hbm [shape: f32[1,32], index: 4, kind: input, shape index: {}]   ;;  %s2950_s5 = inlined_call_operand.hbm [shape: bf16[2,3,32,32], index: 5, kind: input, shape index: {}]   ;;  %s2951_s6 = inlined_call_operand.hbm [shape: bf16[2,3,32,32], index: 6, kind: input, shape index: {}]   ;;  %s2952_s7 = inlined_call_operand.vmem [shape: f32[2,1,32], index: 7, kind: input, shape index: {}]   ;;  %s2953_s8 = inlined_call_operand.vmem [shape: f32[2,1,32], index: 8, kind: input, shape index: {}]   ;;  %s2954_s9 = inlined_call_operand.hbm [shape: bf16[1,32,32], index: 9, kind: input, shape index: {}]   ;;  %s2955_s10 = inlined_call_operand.vmem [shape: f32[1,1,32], index: 10, kind: input, shape index: {}]   ;;  %s2956_s11 = inlined_call_operand.vmem [shape: bf16[2,32,32], index: 11, kind: input, shape index: {}]   ;;  %s2957_s12 = inlined_call_operand.vmem [shape: f32[2,1,32], index: 12, kind: input, shape index: {}]   ;;  %s2958_s13 = inlined_call_operand.vmem [shape: bf16[32,4], index: 13, kind: input, shape index: {}]   ;;  %s2959_s14 = inlined_call_operand.vmem [shape: f32[1,4], index: 14, kind: input, shape index: {}]   ;;  %s2960_s15 = inlined_call_operand.vmem [shape: bf16[32,4], index: 15, kind: input, shape index: {}]   ;;  %s2961_s16 = inlined_call_operand.vmem [shape: f32[1,4], index: 16, kind: input, shape index: {}]   ;;  %s2962_s17 = inlined_call_operand.vmem [shape: f32[2,3,16,4], index: 17, kind: output, shape index: {}]  }
   0x1   :  { %2963 = sst [smem:[#allocation16_spill]] %s2945_s0 }
   0x2   :  { %2964 = sst [smem:[#allocation17_spill]] %s2946_s1 }
   0x3   :  { %2965 = sst [smem:[#allocation18_spill]] %s2947_s2 }
   0x4   :  { %s2966_s2 = sld [smem:[#allocation16_spill]] }
   0xa   :  { %23 = dma.hbm_to_smem %s2966_s2, 16, %s2523_s24, [#allocation3] }
   0xb   :  { %2505 = dma.done.wait [#allocation3], 16 }
   0xc   :  { %2506 = vsyncadd [#allocation3], 4294967280 }
   0xd   :  { %25 = sfence }
   0xe   :  { %26 = vsyncpa [#allocation6], 0 }
   0xf   :  { %27 = vsyncpa [#allocation8], 0 }
  0x10   :  { %28 = vsyncpa [#allocation11], 0  ;;  %s2625_s27 = smov 0  }
  0x11 LB: > { %s2524_s28 = smov [#allocation7]   ;;  %s2631_s0 = sadd.s32 4294967295, %s2521_s27   ;;  %s2521_s27 = sphi %s2625_s27, %s34_s27  }
  0x12   : > { %s437_s29 = sshll.u32 %s2524_s28, 4  ;;  %p1983_p0 = scmp.ge.s32.totalorder %s2521_s27, 1  ;;  %s438_s29 = int_to_ptr.vmem [resolvable:$true] %s437_s29 }
  0x13   : > { %p411_p1 = scmp.lt.s32.totalorder %s2521_s27, 3  ;;  %p2308_p2 = scmp.eq.s32.totalorder %s2631_s0, 0 }
  0x14   : > { %s2525_s30 = smov [#allocation5]   ;;  %s2526_s1 = smov [#allocation9]  }
  0x15   : > { %p2636_p3 = pnand %p1983_p0, %p411_p1  ;;  %s427_s18 = sshll.u32 %s2525_s30, 4  ;;  %s2642_s18 = int_to_ptr.vmem [resolvable:$true] %s427_s18 }
  0x16   : > { %s450_s20 = sshll.u32 %s2526_s1, 4  ;;  %s2527_s21 = smov [#allocation10]   ;;  %s2650_s20 = int_to_ptr.vmem [resolvable:$true] %s450_s20 }
  0x17   : > { %p2295_p4 = pneg %p2636_p3  ;;  %s2652_s22 = sshll.u32 %s2527_s21, 4  ;;  %s470_s22 = int_to_ptr.vmem [resolvable:$true] %s2652_s22 }
  0x18   : > { %s2408_s23 = scalar_lea.vmem %s438_s29, 1536  ;;  %p2416_p10 = scmp.lt.s32.totalorder %s438_s29, %s438_s29 }
  0x19   : > { %p2646_p5 = pnand %p2308_p2, %p2295_p4  ;;  %p2409_p7 = scmp.ne.s32.totalorder %s438_s29, %s2408_s23 }
  0x1a   : > { %p2417_p11 = scmp.lt.s32.totalorder %s2408_s23, %s2408_s23 }
  0x1b   : > { %p2399_p6 = pneg %p2646_p5 }
  0x1c   : > { %p2418_p12 = por %p2417_p11, %p2416_p10 }
  0x1d   : > { %p2411_p8 = pnand %p2409_p7, %p2399_p6 }
  0x1f   : > { %p2412_p9 = pneg %p2411_p8 }
  0x21   : > { %p2419_p13 = pnand %p2418_p12, %p2412_p9 }
  0x23   : > { %2422 = shalt.err (!%p2419_p13)
}
  0x24   : > { %s2528_s24 = smov 64   ;;  %s2529_s25 = smov 4  }
  0x25   : > { %2301 = dma.hbm_to_vmem [thread:$0]  (!%p2646_p5), %s2950_s5, 1536, %s438_s29, [#allocation8], %s2528_s24, %s2528_s24, %s2529_s25  }
  0x26   : > { %s2434_s30 = scalar_lea.vmem %s2642_s18, 16  ;;  %s2441_s1 = scalar_lea.vmem %s2642_s18, 32 }
  0x27   : > { %p2435_p0 = scmp.ne.s32.totalorder %s2642_s18, %s2434_s30  ;;  %p2442_p7 = scmp.lt.s32.totalorder %s2642_s18, %s2642_s18 }
  0x28   : > { %p2443_p8 = scmp.lt.s32.totalorder %s2441_s1, %s2434_s30 }
  0x29   : > { %p2437_p1 = pnand %p2435_p0, %p2399_p6 }
  0x2a   : > { %p2444_p9 = por %p2443_p8, %p2442_p7 }
  0x2b   : > { %p2438_p4 = pneg %p2437_p1 }
  0x2d   : > { %p2445_p10 = pnand %p2444_p9, %p2438_p4 }
  0x2f   : > { %2448 = shalt.err (!%p2445_p10)
}
  0x30   : > { %2298 = dma.hbm_to_vmem [thread:$0]  (!%p2646_p5), %s2949_s4, 16, %s2642_s18, [#allocation6]  }
  0x31   : > { %s2460_s29 = scalar_lea.vmem %s2650_s20, 1536  ;;  %p2468_p0 = scmp.lt.s32.totalorder %s2650_s20, %s2650_s20 }
  0x32   : > { %p2461_p11 = scmp.ne.s32.totalorder %s2650_s20, %s2460_s29  ;;  %p2469_p1 = scmp.lt.s32.totalorder %s2460_s29, %s2460_s29 }
  0x34   : > { %p2463_p12 = pnand %p2461_p11, %p2399_p6  ;;  %p2470_p4 = por %p2469_p1, %p2468_p0 }
  0x36   : > { %p2464_p13 = pneg %p2463_p12 }
  0x38   : > { %p2471_p7 = pnand %p2470_p4, %p2464_p13 }
  0x3a   : > { %2474 = shalt.err (!%p2471_p7)
}
  0x3b   : > { %2304 = dma.hbm_to_vmem [thread:$0]  (!%p2646_p5), %s2951_s6, 1536, %s2650_s20, [#allocation8], %s2528_s24, %s2528_s24, %s2529_s25  }
  0x3c   : > { %s2486_s28 = scalar_lea.vmem %s470_s22, 256  ;;  %p2494_p11 = scmp.lt.s32.totalorder %s470_s22, %s470_s22 }
  0x3d   : > { %p2487_p8 = scmp.ne.s32.totalorder %s470_s22, %s2486_s28  ;;  %p2495_p12 = scmp.lt.s32.totalorder %s2486_s28, %s2486_s28 }
  0x3f   : > { %p2489_p9 = pnand %p2487_p8, %p2399_p6  ;;  %p2496_p13 = por %p2495_p12, %p2494_p11 }
  0x41   : > { %p2490_p10 = pneg %p2489_p9 }
  0x43   : > { %p2497_p0 = pnand %p2496_p13, %p2490_p10 }
  0x45   : > { %2500 = shalt.err (!%p2497_p0)
}
  0x46   : > { %2307 = dma.hbm_to_vmem [thread:$0]  (!%p2646_p5), %s2954_s9, 256, %s470_s22, [#allocation11], %s2528_s24, %s2528_s24, %s2529_s25  }
  0x47   : > { %522 = sbr.rel (%p2636_p3) target bundleno = 1422 (0x58e), region = 84 }
  0x4c   : > { %2508 = dma.done.wait (%p2308_p2), [#allocation6], 16  }
  0x4d   : > { %2510 = vsyncadd (%p2308_p2), [#allocation6], 4294967280 }
  0x4e   : > { %2512 = dma.done.wait (%p2308_p2), [#allocation8], 3072  }
  0x4f   : > { %2514 = vsyncadd (%p2308_p2), [#allocation8], 4294964224 }
  0x50   : > { %2516 = dma.done.wait (%p2308_p2), [#allocation11], 256  }
  0x51   : > { %2518 = vsyncadd (%p2308_p2), [#allocation11], 4294967040  ;;  %p589_p3 = scmp.lt.s32.totalorder %s2631_s0, 1  ;;  %v2530_v0 = vmov 0.0   ;;  %vm2531_vm0 = vmmov 0   ;;  %s2969_s24 = sld [smem:[#allocation17_spill]]  ;;  %v606_v10 = vlaneseq }
  0x52   : > { %2134 = vmatprep.subr.bf16.mxu0 %v2530_v0  ;;  %2138 = vmatprep.mubr.msk.bf16.mxu0 %vm2531_vm0, %v2530_v0  ;;  %v2333_v1 = vld [vmem:[%s2948_s3 + $0x8] sm:$0xff]   ;;  %v2334_v2 = vld [vmem:[%s2948_s3] sm:$0xff]   ;;  %vm642_vm1 = vcmask 261120   ;;  %vm689_vm2 = vcmask 254976   ;;  %s605_s18 = sld [smem:[#allocation4 + %s2631_s0]]  ;;  %v2339_v25 = vld [vmem:[#allocation9 + $0x18] sm:$0xff]  }
  0x53   : > { %s2728_s2 = scalar_select %p589_p3, %s2631_s0, 1  ;;  %2142 = vmatprep.subr.bf16.mxu1 %v2530_v0  ;;  %2146 = vmatprep.mubr.msk.bf16.mxu1 %vm2531_vm0, %v2530_v0  ;;  %690 = vst.msk [vmem:[#allocation2] sm:$0x3] %vm689_vm2, %v2530_v0  ;;  %691 = vst.msk [vmem:[#allocation2 + $0x12] sm:$0x3] %vm689_vm2, %v2530_v0  ;;  %v2335_v6 = vld [vmem:[#allocation9 + $0x8] sm:$0xff]  }
  0x54   : > { %2135 = vmatpush3.bf16.msra.mxu0 %v2333_v1  ;;  %v2336_v7 = vld [vmem:[#allocation7 + $0x8] sm:$0xff]   ;;  %v2337_v8 = vld [vmem:[#allocation9] sm:$0xff]   ;;  %v607_v11 = vshrl.u32 %v606_v10, 7  ;;  %v2001_v14 = vld [vmem:[#allocation5] ss:$0 sm:$0xff]  ;;  %vm1864_vm5 = vcmask 31744  }
  0x55   : > { %s2078_s19 = sshll.u32 %s2728_s2, 4  ;;  %2136 = vmatprep.subr.bf16.mxu0 %v2530_v0  ;;  %2143 = vmatpush3.bf16.msra.mxu1 %v2336_v7  ;;  %v2338_v9 = vld [vmem:[#allocation7] sm:$0xff]   ;;  %v2340_v28 = vld [vmem:[#allocation7 + $0x18] sm:$0xff]   ;;  %v2341_v30 = vld [vmem:[#allocation9 + $0x10] sm:$0xff]   ;;  %s2278_s20 = smul.u32 48, %s2728_s2 }
  0x56   : > { %2144 = vmatprep.subr.bf16.mxu1 %v2530_v0  ;;  %v608_v13 = vadd.s32 8, %v607_v11  ;;  %v2342_v31 = vld [vmem:[#allocation7 + $0x10] sm:$0xff]   ;;  %v2343_v34 = vld [vmem:[#allocation9 + $0x28] sm:$0xff]   ;;  %v2345_v37 = vld [vmem:[#allocation9 + $0x20] sm:$0xff]   ;;  %s2970_s28 = sld [smem:[#allocation18_spill]] }
  0x57   : > { %s593_s25 = scalar_lea.vmem %s2969_s24, %s2078_s19  ;;  %v2344_v35 = vld [vmem:[#allocation7 + $0x28] sm:$0xff]   ;;  %v2346_v38 = vld [vmem:[#allocation7 + $0x20] sm:$0xff]   ;;  %s2917_s26 = scalar_lea.vmem %s2962_s17, %s2278_s20 }
  0x58   : > { %v616_v3 = vld [vmem:[%s593_s25] sm:$0xff]  ;;  %v617_v4 = vld [vmem:[%s593_s25 + $0x8] sm:$0xff]  ;;  %2137 = vmatpush3.bf16.msra.mxu0 %v2334_v2  ;;  %v609_v12 = vstv %s605_s18 }
  0x59   : > { %v618_v5 = vpack.c.bf16 %v617_v4, %v616_v3  ;;  %2150 = vmatprep.subr.bf16.mxu0 %v2530_v0  ;;  %2145 = vmatpush3.bf16.msra.mxu1 %v2338_v9  ;;  %vm610_vm3 = vcmp.lt.s32.totalorder %v607_v11, %v609_v12  ;;  %vm611_vm4 = vcmp.lt.s32.totalorder %v608_v13, %v609_v12  ;;  %v2347_v42 = vld [vmem:[#allocation10 + $0x8] sm:$0xff]   ;;  %v2349_v44 = vld [vmem:[#allocation10] sm:$0xff]  }
  0x5a   : > { %2158 = vmatprep.subr.bf16.mxu1 %v2530_v0  ;;  %v2758_v15 = vsel %vm610_vm3, 1.0, %v2530_v0  ;;  %v2764_v20 = vsel %vm611_vm4, 1.0, %v2530_v0  ;;  %v2348_v43 = vld [vmem:[%s2956_s11 + $0x8] sm:$0xff]   ;;  %v2350_v45 = vld [vmem:[%s2956_s11] sm:$0xff]  }
  0x5b   : > { %2139 = vmatmul.mubr.msk.bf16.vlgmr.msra.gmra.mxu0 %vm642_vm1, %v618_v5  ;;  %v2006_v56 = vld [vmem:[%s2953_s8] ss:$0 sm:$0xff] }
  0x5c   : > { %2154 = vmatprep.mubr.msk.bf16.mxu0 %vm2531_vm0, %v2530_v0  ;;  %2151 = vmatpush3.bf16.msra.mxu0 %v2335_v6  ;;  %v2005_v4 = vld [vmem:[%s2952_s7] ss:$0 sm:$0xff]  ;;  %s598_s30 = scalar_lea.vmem %s2970_s28, %s2078_s19 }
  0x5d   : > { %2152 = vmatprep.subr.bf16.mxu0 %v2530_v0 }
  0x60   : > { %2153 = vmatpush3.bf16.msra.mxu0 %v2337_v8 }
  0x61   : > { %2166 = vmatprep.subr.bf16.mxu0 %v2530_v0 }
 0x11b   : > { %v680_v16 = vpop.f32.mrf.mxu0 }
 0x11c   : > { %v681_v17 = vadd.f32 %v2001_v14, %v680_v16 }
 0x11d   : > { %v2140_v18 = vpop.f32.mrf.mxu0 }
 0x11e   : > { %v2761_v19 = vmul.f32 %v2758_v15, %v681_v17 }
 0x11f   : > { %v683_v21 = vpop.f32.mrf.mxu0 }
 0x120   : > { %692 = vst.msk [vmem:[#allocation2 + $0x2] sm:$0xff] %vm642_vm1, %v2761_v19  ;;  %v684_v22 = vadd.f32 %v2001_v14, %v683_v21 }
 0x121   : > { %v2141_v23 = vpop.f32.mrf.mxu0 }
 0x122   : > { %v2769_v24 = vmul.f32 %v2764_v20, %v684_v22 }
 0x124   : > { %693 = vst.msk [vmem:[#allocation2 + $0xa] sm:$0xff] %vm642_vm1, %v2769_v24 }
 0x127   : > { %v708_v26 = vld [vmem:[#allocation2 + $0x1] sm:$0xff] }
 0x128   : > { %v832_v33 = vld [vmem:[#allocation2 + $0x2] sm:$0xff] }
 0x12b   : > { %v709_v27 = vld [vmem:[#allocation2 + $0x9] sm:$0xff] }
 0x12c   : > { %v710_v29 = vpack.c.bf16 %v709_v27, %v708_v26  ;;  %v833_v32 = vld [vmem:[#allocation2 + $0xa] sm:$0xff] }
 0x12d   : > { %v834_v36 = vpack.c.bf16 %v833_v32, %v832_v33  ;;  %v958_v39 = vld [vmem:[#allocation2 + $0x3] sm:$0xff]  ;;  %v959_v40 = vld [vmem:[#allocation2 + $0xb] sm:$0xff] }
 0x12e   : > { %2147 = vmatmul.mubr.msk.bf16.vlgmr.msra.gmra.mxu1 %vm642_vm1, %v710_v29  ;;  %2155 = vmatmul.mubr.msk.bf16.vlgmr.msra.gmra.mxu0 %vm642_vm1, %v710_v29  ;;  %v960_v41 = vpack.c.bf16 %v959_v40, %v958_v39  ;;  %v2352_v39 = vld [vmem:[#allocation7 + $0x38] sm:$0xff]   ;;  %v2353_v40 = vld [vmem:[#allocation9 + $0x30] sm:$0xff]  }
 0x12f   : > { %2167 = vmatpush3.bf16.msra.mxu0 %v2339_v25  ;;  %2159 = vmatpush3.bf16.msra.mxu1 %v2340_v28 }
 0x130   : > { %2168 = vmatprep.subr.bf16.mxu0 %v2530_v0  ;;  %2160 = vmatprep.subr.bf16.mxu1 %v2530_v0 }
 0x131   : > { %2162 = vmatprep.mubr.msk.bf16.mxu1 %vm2531_vm0, %v2530_v0  ;;  %2170 = vmatprep.mubr.msk.bf16.mxu0 %vm2531_vm0, %v2530_v0 }
 0x133   : > { %2169 = vmatpush3.bf16.msra.mxu0 %v2341_v30  ;;  %2161 = vmatpush3.bf16.msra.mxu1 %v2342_v31 }
 0x134   : > { %2182 = vmatprep.subr.bf16.mxu0 %v2530_v0  ;;  %2174 = vmatprep.subr.bf16.mxu1 %v2530_v0 }
 0x136   : > { %2163 = vmatmul.mubr.msk.bf16.vlgmr.msra.gmra.mxu1 %vm642_vm1, %v834_v36  ;;  %2171 = vmatmul.mubr.msk.bf16.vlgmr.msra.gmra.mxu0 %vm642_vm1, %v834_v36 }
 0x137   : > { %2183 = vmatpush3.bf16.msra.mxu0 %v2343_v34  ;;  %2175 = vmatpush3.bf16.msra.mxu1 %v2344_v35 }
 0x138   : > { %2184 = vmatprep.subr.bf16.mxu0 %v2530_v0  ;;  %2176 = vmatprep.subr.bf16.mxu1 %v2530_v0 }
 0x139   : > { %2178 = vmatprep.mubr.msk.bf16.mxu1 %vm2531_vm0, %v2530_v0  ;;  %2186 = vmatprep.mubr.msk.bf16.mxu0 %vm2531_vm0, %v2530_v0 }
 0x13b   : > { %2185 = vmatpush3.bf16.msra.mxu0 %v2345_v37  ;;  %2177 = vmatpush3.bf16.msra.mxu1 %v2346_v38  ;;  %v2351_v38 = vld [vmem:[#allocation9 + $0x38] sm:$0xff]  }
 0x13c   : > { %2198 = vmatprep.subr.bf16.mxu0 %v2530_v0  ;;  %2190 = vmatprep.subr.bf16.mxu1 %v2530_v0 }
 0x13e   : > { %2179 = vmatmul.mubr.msk.bf16.vlgmr.msra.gmra.mxu1 %vm642_vm1, %v960_v41  ;;  %2187 = vmatmul.mubr.msk.bf16.vlgmr.msra.gmra.mxu0 %vm642_vm1, %v960_v41  ;;  %v2354_v41 = vld [vmem:[#allocation7 + $0x30] sm:$0xff]  }
 0x13f   : > { %2194 = vmatprep.mubr.msk.bf16.mxu1 %vm2531_vm0, %v2530_v0  ;;  %2202 = vmatprep.mubr.msk.bf16.mxu0 %vm2531_vm0, %v2530_v0 }
 0x140   : > { %2199 = vmatpush3.bf16.msra.mxu0 %v2347_v42  ;;  %2191 = vmatpush3.bf16.msra.mxu1 %v2348_v43  ;;  %v2029_v42 = vld [vmem:[%s2955_s10] ss:$0 sm:$0xff] }
 0x141   : > { %2200 = vmatprep.subr.bf16.mxu0 %v2530_v0  ;;  %2192 = vmatprep.subr.bf16.mxu1 %v2530_v0 }
 0x144   : > { %2201 = vmatpush3.bf16.msra.mxu0 %v2349_v44  ;;  %2193 = vmatpush3.bf16.msra.mxu1 %v2350_v45 }
 0x145   : > { %2214 = vmatprep.subr.bf16.mxu0 %v2530_v0  ;;  %2206 = vmatprep.subr.bf16.mxu1 %v2530_v0 }
 0x1ee   : > { %v764_v46 = vpop.f32.mrf.mxu1  ;;  %v823_v47 = vpop.f32.mrf.mxu0 }
 0x1ef   : > { %v830_v61 = vadd.f32 %v2006_v56, %v823_v47  ;;  %v771_v11 = vadd.f32 %v2005_v4, %v764_v46 }
 0x1f0   : > { %v2148_v48 = vpop.f32.mrf.mxu1  ;;  %v2156_v49 = vpop.f32.mrf.mxu0 }
 0x1f2   : > { %v767_v50 = vpop.f32.mrf.mxu1  ;;  %v826_v51 = vpop.f32.mrf.mxu0 }
 0x1f3   : > { %v831_v5 = vadd.f32 %v2006_v56, %v826_v51  ;;  %v772_v14 = vadd.f32 %v2005_v4, %v767_v50  ;;  %v2361_v4 = vld [vmem:[#allocation9 + $0x50] sm:$0xff]  }
 0x1f4   : > { %v2149_v52 = vpop.f32.mrf.mxu1  ;;  %v2157_v53 = vpop.f32.mrf.mxu0 }
 0x1f6   : > { %v889_v54 = vpop.f32.mrf.mxu1  ;;  %v949_v55 = vpop.f32.mrf.mxu0 }
 0x1f7   : > { %v956_v1 = vadd.f32 %v949_v55, %v830_v61  ;;  %v896_v17 = vadd.f32 %v889_v54, %v771_v11  ;;  %v2357_v61 = vld [vmem:[#allocation9 + $0x40] sm:$0xff]  }
 0x1f8   : > { %v2164_v57 = vpop.f32.mrf.mxu1  ;;  %v2172_v58 = vpop.f32.mrf.mxu0 }
 0x1f9   : > { %v2355_v57 = vld [vmem:[#allocation9 + $0x48] sm:$0xff]  }
 0x1fa   : > { %v892_v59 = vpop.f32.mrf.mxu1  ;;  %v952_v60 = vpop.f32.mrf.mxu0 }
 0x1fb   : > { %v957_v9 = vadd.f32 %v952_v60, %v831_v5  ;;  %v897_v22 = vadd.f32 %v892_v59, %v772_v14  ;;  %v2362_v5 = vld [vmem:[#allocation7 + $0x50] sm:$0xff]  }
 0x1fc   : > { %v2165_v62 = vpop.f32.mrf.mxu1  ;;  %v2173_v63 = vpop.f32.mrf.mxu0 }
 0x1fd   : > { %v2358_v62 = vld [vmem:[#allocation7 + $0x40] sm:$0xff]  }
 0x1fe   : > { %v1015_v2 = vpop.f32.mrf.mxu1  ;;  %v1075_v3 = vpop.f32.mrf.mxu0 }
 0x1ff   : > { %v1082_v6 = vadd.f32 %v1075_v3, %v956_v1  ;;  %v1022_v25 = vadd.f32 %v1015_v2, %v896_v17  ;;  %v2359_v1 = vld [vmem:[#allocation9 + $0x58] sm:$0xff]  }
 0x200   : > { %v2180_v7 = vpop.f32.mrf.mxu1  ;;  %v2188_v8 = vpop.f32.mrf.mxu0  ;;  %v2360_v2 = vld [vmem:[#allocation7 + $0x58] sm:$0xff]  }
 0x201   : > { %v1086_v10 = vmul.f32 0.5, %v1082_v6 }
 0x202   : > { %v1018_v12 = vpop.f32.mrf.mxu1  ;;  %v1078_v13 = vpop.f32.mrf.mxu0 }
 0x203   : > { %2369 = vtanh.f32 %v1086_v10  ;;  %v1083_v16 = vadd.f32 %v1078_v13, %v957_v9  ;;  %v1023_v26 = vadd.f32 %v1018_v12, %v897_v22  ;;  %v2363_v9 = vld [vmem:[%s2956_s11 + $0x18] sm:$0xff]   ;;  %v2364_v10 = vld [vmem:[%s2956_s11 + $0x10] sm:$0xff]  }
 0x204   : > { %v2181_v18 = vpop.f32.mrf.mxu1  ;;  %v2189_v21 = vpop.f32.mrf.mxu0 }
 0x205   : > { %v1087_v23 = vmul.f32 0.5, %v1083_v16 }
 0x207   : > { %2371 = vtanh.f32 %v1087_v23 }
 0x208   : > { %2373 = vtanh.f32 %v1022_v25  ;;  %v2036_v25 = vld [vmem:[%s2953_s8 + $0x1] ss:$0 sm:$0xff] }
 0x209   : > { %2375 = vtanh.f32 %v1023_v26 }
 0x210   : > { %v2370_v27 = vpop.eup %2369 }
 0x211   : > { %v1090_v28 = vadd.f32 1.0, %v2370_v27 }
 0x213   : > { %v1092_v30 = vmul.f32 0.5, %v1090_v28 }
 0x214   : > { %v2372_v29 = vpop.eup %2371 }
 0x215   : > { %v1091_v31 = vadd.f32 1.0, %v2372_v29  ;;  %v2374_v32 = vpop.eup %2373 }
 0x216   : > { %v2376_v34 = vpop.eup %2375  ;;  %v1094_v35 = vmul.f32 %v2374_v32, %v1092_v30 }
 0x217   : > { %v1093_v33 = vmul.f32 0.5, %v1091_v31 }
 0x219   : > { %v1095_v36 = vmul.f32 %v2376_v34, %v1093_v33 }
 0x21b   : > { %v1096_v37 = vpack.c.bf16 %v1095_v36, %v1094_v35  ;;  %v2034_v36 = vld [vmem:[%s2952_s7 + $0x1] ss:$0 sm:$0xff] }
 0x21d   : > { %2195 = vmatmul.mubr.msk.bf16.vlgmr.msra.gmra.mxu1 %vm642_vm1, %v1096_v37  ;;  %2203 = vmatmul.mubr.msk.bf16.vlgmr.msra.gmra.mxu0 %vm642_vm1, %v1096_v37 }
 0x21e   : > { %2210 = vmatprep.mubr.msk.bf16.mxu1 %vm2531_vm0, %v2530_v0  ;;  %2218 = vmatprep.mubr.msk.bf16.mxu0 %vm2531_vm0, %v2530_v0 }
 0x21f   : > { %2215 = vmatpush3.bf16.msra.mxu0 %v2351_v38  ;;  %2207 = vmatpush3.bf16.msra.mxu1 %v2352_v39 }
 0x220   : > { %2216 = vmatprep.subr.bf16.mxu0 %v2530_v0  ;;  %2208 = vmatprep.subr.bf16.mxu1 %v2530_v0 }
 0x223   : > { %2217 = vmatpush3.bf16.msra.mxu0 %v2353_v40  ;;  %2209 = vmatpush3.bf16.msra.mxu1 %v2354_v41 }
 0x224   : > { %2230 = vmatprep.subr.bf16.mxu0 %v2530_v0  ;;  %2222 = vmatprep.subr.bf16.mxu1 %v2530_v0 }
 0x2dd   : > { %v2828_v43 = vpop.f32.mrf.mxu1  ;;  %v1221_v44 = vpop.f32.mrf.mxu0 }
 0x2de   : > { %v1222_v45 = vadd.f32 %v2029_v42, %v1221_v44 }
 0x2df   : > { %v2196_v46 = vpop.f32.mrf.mxu1  ;;  %v2204_v47 = vpop.f32.mrf.mxu0 }
 0x2e0   : > { %v1228_v48 = vadd.f32 %v1222_v45, %v2761_v19  ;;  %v2356_v19 = vld [vmem:[#allocation7 + $0x48] sm:$0xff]  }
 0x2e1   : > { %v2831_v49 = vpop.f32.mrf.mxu1  ;;  %v1224_v50 = vpop.f32.mrf.mxu0 }
 0x2e2   : > { %v1230_v51 = vmul.f32 %v2758_v15, %v1228_v48  ;;  %v1225_v52 = vadd.f32 %v2029_v42, %v1224_v50 }
 0x2e3   : > { %v2197_v53 = vpop.f32.mrf.mxu1  ;;  %v2205_v54 = vpop.f32.mrf.mxu0 }
 0x2e4   : > { %1232 = vst.msk [vmem:[#allocation2 + $0x2] sm:$0xff] %vm642_vm1, %v1230_v51  ;;  %v1229_v55 = vadd.f32 %v1225_v52, %v2769_v24 }
 0x2e6   : > { %v1231_v56 = vmul.f32 %v2764_v20, %v1229_v55 }
 0x2e8   : > { %1233 = vst.msk [vmem:[#allocation2 + $0xa] sm:$0xff] %vm642_vm1, %v1231_v56 }
 0x2eb   : > { %v1250_v58 = vld [vmem:[#allocation2] sm:$0xff] }
 0x2ec   : > { %v1376_v63 = vld [vmem:[#allocation2 + $0x2] sm:$0xff] }
 0x2ef   : > { %v1251_v59 = vld [vmem:[#allocation2 + $0x8] sm:$0xff] }
 0x2f0   : > { %v1252_v60 = vpack.c.bf16 %v1251_v59, %v1250_v58  ;;  %v1377_v24 = vld [vmem:[#allocation2 + $0xa] sm:$0xff] }
 0x2f1   : > { %v1378_v3 = vpack.c.bf16 %v1377_v24, %v1376_v63  ;;  %v1502_v6 = vld [vmem:[#allocation2 + $0x4] sm:$0xff]  ;;  %v1503_v7 = vld [vmem:[#allocation2 + $0xc] sm:$0xff] }
 0x2f2   : > { %2211 = vmatmul.mubr.msk.bf16.vlgmr.msra.gmra.mxu1 %vm642_vm1, %v1252_v60  ;;  %2219 = vmatmul.mubr.msk.bf16.vlgmr.msra.gmra.mxu0 %vm642_vm1, %v1252_v60  ;;  %v1504_v8 = vpack.c.bf16 %v1503_v7, %v1502_v6  ;;  %v2368_v6 = vld [vmem:[%s2958_s13] sm:$0xff]  }
 0x2f3   : > { %2231 = vmatpush3.bf16.msra.mxu0 %v2355_v57  ;;  %2223 = vmatpush3.bf16.msra.mxu1 %v2356_v19  ;;  %v2025_v7 = vld [vmem:[%s2957_s12] ss:$0 sm:$0xff] }
 0x2f4   : > { %2232 = vmatprep.subr.bf16.mxu0 %v2530_v0  ;;  %2224 = vmatprep.subr.bf16.mxu1 %v2530_v0 }
 0x2f5   : > { %2226 = vmatprep.mubr.msk.bf16.mxu1 %vm2531_vm0, %v2530_v0  ;;  %2234 = vmatprep.mubr.msk.bf16.mxu0 %vm2531_vm0, %v2530_v0 }
 0x2f7   : > { %2233 = vmatpush3.bf16.msra.mxu0 %v2357_v61  ;;  %2225 = vmatpush3.bf16.msra.mxu1 %v2358_v62 }
 0x2f8   : > { %2246 = vmatprep.subr.bf16.mxu0 %v2530_v0  ;;  %2238 = vmatprep.subr.bf16.mxu1 %v2530_v0 }
 0x2fa   : > { %2227 = vmatmul.mubr.msk.bf16.vlgmr.msra.gmra.mxu1 %vm642_vm1, %v1378_v3  ;;  %2235 = vmatmul.mubr.msk.bf16.vlgmr.msra.gmra.mxu0 %vm642_vm1, %v1378_v3  ;;  %v2365_v3 = vld [vmem:[%s2960_s15 + $0x8] sm:$0xff]  }
 0x2fb   : > { %2247 = vmatpush3.bf16.msra.mxu0 %v2359_v1  ;;  %2239 = vmatpush3.bf16.msra.mxu1 %v2360_v2 }
 0x2fc   : > { %2248 = vmatprep.subr.bf16.mxu0 %v2530_v0  ;;  %2240 = vmatprep.subr.bf16.mxu1 %v2530_v0 }
 0x2fd   : > { %2242 = vmatprep.mubr.msk.bf16.mxu1 %vm2531_vm0, %v2530_v0  ;;  %2250 = vmatprep.mubr.msk.bf16.mxu0 %vm2531_vm0, %v2530_v0 }
 0x2ff   : > { %2249 = vmatpush3.bf16.msra.mxu0 %v2361_v4  ;;  %2241 = vmatpush3.bf16.msra.mxu1 %v2362_v5  ;;  %v2366_v4 = vld [vmem:[%s2958_s13 + $0x8] sm:$0xff]   ;;  %v2367_v5 = vld [vmem:[%s2960_s15] sm:$0xff]  }
 0x300   : > { %2254 = vmatprep.subr.bf16.mxu1 %v2530_v0  ;;  %2262 = vmatprep.subr.bf16.mxu0 %v2530_v0 }
 0x302   : > { %2243 = vmatmul.mubr.msk.bf16.vlgmr.msra.gmra.mxu1 %vm642_vm1, %v1504_v8  ;;  %2251 = vmatmul.mubr.msk.bf16.vlgmr.msra.gmra.mxu0 %vm642_vm1, %v1504_v8  ;;  %v1158_v8 = vadd.f32 %v2025_v7, %v2828_v43 }
 0x303   : > { %2258 = vmatprep.mubr.msk.bf16.mxu1 %vm2531_vm0, %v2530_v0  ;;  %2266 = vmatprep.mubr.msk.bf16.mxu0 %vm2531_vm0, %v2530_v0 }
 0x304   : > { %2255 = vmatpush3.bf16.msra.mxu1 %v2363_v9  ;;  %2263 = vmatpush3.bf16.msra.mxu0 %v2366_v4 }
 0x305   : > { %2256 = vmatprep.subr.bf16.mxu1 %v2530_v0  ;;  %2264 = vmatprep.subr.bf16.mxu0 %v2530_v0 }
 0x308   : > { %2257 = vmatpush3.bf16.msra.mxu1 %v2364_v10  ;;  %2265 = vmatpush3.bf16.msra.mxu0 %v2368_v6 }
 0x309   : > { %2270 = vmatprep.subr.bf16.mxu1 %v2530_v0 }
 0x3b2   : > { %v1307_v11 = vpop.f32.mrf.mxu1  ;;  %v1367_v12 = vpop.f32.mrf.mxu0 }
 0x3b3   : > { %v1374_v30 = vadd.f32 %v2036_v25, %v1367_v12  ;;  %v1314_v44 = vadd.f32 %v2034_v36, %v1307_v11  ;;  %v1161_v12 = vadd.f32 %v2025_v7, %v2831_v49  ;;  %v2068_v49 = vld [vmem:[%s2961_s16] ss:$0 sm:$0xff] }
 0x3b4   : > { %v2212_v13 = vpop.f32.mrf.mxu1  ;;  %v2220_v14 = vpop.f32.mrf.mxu0 }
 0x3b6   : > { %v1310_v16 = vpop.f32.mrf.mxu1  ;;  %v1370_v17 = vpop.f32.mrf.mxu0 }
 0x3b7   : > { %v1375_v37 = vadd.f32 %v2036_v25, %v1370_v17  ;;  %v1315_v47 = vadd.f32 %v2034_v36, %v1310_v16 }
 0x3b8   : > { %v2213_v18 = vpop.f32.mrf.mxu1  ;;  %v2221_v21 = vpop.f32.mrf.mxu0 }
 0x3ba   : > { %v1433_v22 = vpop.f32.mrf.mxu1  ;;  %v1493_v23 = vpop.f32.mrf.mxu0 }
 0x3bb   : > { %v1500_v33 = vadd.f32 %v1493_v23, %v1374_v30  ;;  %v1440_v50 = vadd.f32 %v1433_v22, %v1314_v44  ;;  %v2064_v23 = vld [vmem:[%s2959_s14] ss:$0 sm:$0xff] }
 0x3bc   : > { %v2228_v26 = vpop.f32.mrf.mxu1  ;;  %v2236_v27 = vpop.f32.mrf.mxu0  ;;  %v1852_v44 = vld [vmem:[%s598_s30] sm:$0xff] }
 0x3be   : > { %v1436_v28 = vpop.f32.mrf.mxu1  ;;  %v1496_v29 = vpop.f32.mrf.mxu0 }
 0x3bf   : > { %v1501_v41 = vadd.f32 %v1496_v29, %v1375_v37  ;;  %v1441_v53 = vadd.f32 %v1436_v28, %v1315_v47  ;;  %v1853_v47 = vld [vmem:[%s598_s30 + $0x8] sm:$0xff] }
 0x3c0   : > { %v2229_v31 = vpop.f32.mrf.mxu1  ;;  %v2237_v32 = vpop.f32.mrf.mxu0 }
 0x3c2   : > { %v1559_v34 = vpop.f32.mrf.mxu1  ;;  %v1619_v35 = vpop.f32.mrf.mxu0 }
 0x3c3   : > { %v1626_v38 = vadd.f32 %v1619_v35, %v1500_v33  ;;  %v1566_v55 = vadd.f32 %v1559_v34, %v1440_v50 }
 0x3c4   : > { %v2244_v39 = vpop.f32.mrf.mxu1  ;;  %v2252_v40 = vpop.f32.mrf.mxu0 }
 0x3c5   : > { %v1630_v42 = vmul.f32 0.5, %v1626_v38 }
 0x3c6   : > { %v1562_v45 = vpop.f32.mrf.mxu1  ;;  %v1622_v46 = vpop.f32.mrf.mxu0 }
 0x3c7   : > { %2377 = vtanh.f32 %v1630_v42  ;;  %v1627_v48 = vadd.f32 %v1622_v46, %v1501_v41  ;;  %v1567_v56 = vadd.f32 %v1562_v45, %v1441_v53 }
 0x3c8   : > { %v2245_v51 = vpop.f32.mrf.mxu1  ;;  %v2253_v52 = vpop.f32.mrf.mxu0 }
 0x3c9   : > { %v1631_v54 = vmul.f32 0.5, %v1627_v48 }
 0x3cb   : > { %2379 = vtanh.f32 %v1631_v54 }
 0x3cc   : > { %2381 = vtanh.f32 %v1566_v55 }
 0x3cd   : > { %2383 = vtanh.f32 %v1567_v56 }
 0x3d4   : > { %v2378_v57 = vpop.eup %2377 }
 0x3d5   : > { %v1634_v58 = vadd.f32 1.0, %v2378_v57 }
 0x3d7   : > { %v1636_v19 = vmul.f32 0.5, %v1634_v58 }
 0x3d8   : > { %v2380_v59 = vpop.eup %2379 }
 0x3d9   : > { %v1635_v60 = vadd.f32 1.0, %v2380_v59  ;;  %v2382_v61 = vpop.eup %2381 }
 0x3da   : > { %v2384_v24 = vpop.eup %2383  ;;  %v1638_v63 = vmul.f32 %v2382_v61, %v1636_v19 }
 0x3db   : > { %v1637_v62 = vmul.f32 0.5, %v1635_v60 }
 0x3dd   : > { %v1639_v1 = vmul.f32 %v2384_v24, %v1637_v62 }
 0x3df   : > { %v1640_v2 = vpack.c.bf16 %v1639_v1, %v1638_v63 }
 0x3e1   : > { %2259 = vmatmul.mubr.msk.bf16.vlgmr.msra.gmra.mxu1 %vm642_vm1, %v1640_v2 }
 0x3e2   : > { %2274 = vmatprep.mubr.msk.bf16.mxu1 %vm2531_vm0, %v2530_v0  ;;  %2271 = vmatpush3.bf16.msra.mxu1 %v2365_v3 }
 0x3e3   : > { %2272 = vmatprep.subr.bf16.mxu1 %v2530_v0  ;;  %v2063_v0 = vld [vmem:[%s2957_s12 + $0x1] ss:$0 sm:$0xff] }
 0x3e6   : > { %2273 = vmatpush3.bf16.msra.mxu1 %v2367_v5 }
 0x4a1   : > { %v1695_v9 = vpop.f32.mrf.mxu1 }
 0x4a2   : > { %v1702_v10 = vadd.f32 %v1695_v9, %v1158_v8 }
 0x4a3   : > { %v2260_v11 = vpop.f32.mrf.mxu1 }
 0x4a4   : > { %v1712_v14 = vadd.f32 %v2063_v0, %v1702_v10 }
 0x4a5   : > { %v1698_v13 = vpop.f32.mrf.mxu1 }
 0x4a6   : > { %v1703_v16 = vadd.f32 %v1698_v13, %v1161_v12  ;;  %v1714_v21 = vmul.f32 %v2758_v15, %v1712_v14 }
 0x4a7   : > { %v2261_v17 = vpop.f32.mrf.mxu1 }
 0x4a8   : > { %v1713_v18 = vadd.f32 %v2063_v0, %v1703_v16 }
 0x4aa   : > { %v1715_v22 = vmul.f32 %v2764_v20, %v1713_v18 }
 0x4ac   : > { %v1716_v43 = vpack.c.bf16 %v1715_v22, %v1714_v21 }
 0x4ae   : > { %2267 = vmatmul.mubr.msk.bf16.vlgmr.msra.gmra.mxu0 %vm642_vm1, %v1716_v43  ;;  %2275 = vmatmul.mubr.msk.bf16.vlgmr.msra.gmra.mxu1 %vm642_vm1, %v1716_v43 }
 0x56e   : > { %v1777_v25 = vpop.f32.mrf.mxu0  ;;  %v1843_v26 = vpop.f32.mrf.mxu1 }
 0x56f   : > { %v1778_v27 = vadd.f32 %v2064_v23, %v1777_v25  ;;  %v1844_v28 = vadd.f32 %v2068_v49, %v1843_v26 }
 0x570   : > { %v2268_v29 = vpop.f32.mrf.mxu0  ;;  %v2276_v30 = vpop.f32.mrf.mxu1 }
 0x571   : > { %v1784_v31 = vmul.f32 %v2758_v15, %v1778_v27  ;;  %v1850_v32 = vmul.f32 %v2758_v15, %v1844_v28 }
 0x572   : > { %v1780_v33 = vpop.f32.mrf.mxu0  ;;  %v1846_v34 = vpop.f32.mrf.mxu1 }
 0x573   : > { %2072 = vst.msk [vmem:[%s2917_s26 + $0x10] sm:$0xff] %vm1864_vm5, %v1784_v31  ;;  %v1854_v35 = vmul.f32 1.442695, %v1850_v32  ;;  %2074 = vst.msk [vmem:[%s2917_s26 + $0x20] sm:$0xff] %vm1864_vm5, %v1850_v32  ;;  %v1781_v36 = vadd.f32 %v2064_v23, %v1780_v33  ;;  %v1847_v37 = vadd.f32 %v2068_v49, %v1846_v34 }
 0x574   : > { %v2269_v38 = vpop.f32.mrf.mxu0  ;;  %v2277_v39 = vpop.f32.mrf.mxu1 }
 0x575   : > { %2385 = vpow2.f32 %v1854_v35  ;;  %v1785_v40 = vmul.f32 %v2764_v20, %v1781_v36  ;;  %v1851_v41 = vmul.f32 %v2764_v20, %v1847_v37 }
 0x577   : > { %2073 = vst.msk [vmem:[%s2917_s26 + $0x18] sm:$0xff] %vm1864_vm5, %v1785_v40  ;;  %v1856_v42 = vmul.f32 1.442695, %v1851_v41  ;;  %2075 = vst.msk [vmem:[%s2917_s26 + $0x28] sm:$0xff] %vm1864_vm5, %v1851_v41 }
 0x579   : > { %2387 = vpow2.f32 %v1856_v42 }
 0x582   : > { %v2386_v45 = vpop.eup %2385 }
 0x583   : > { %v1858_v46 = vmul.f32 %v2386_v45, %v1852_v44 }
 0x585   : > { %v1860_v48 = vadd.f32 %v1858_v46, %v1784_v31 }
 0x586   : > { %v2388_v50 = vpop.eup %2387 }
 0x587   : > { %v1862_v51 = vmul.f32 %v2758_v15, %v1860_v48  ;;  %v1859_v52 = vmul.f32 %v2388_v50, %v1853_v47 }
 0x589   : > { %1865 = vst.msk [vmem:[%s2917_s26] sm:$0xff] %vm1864_vm5, %v1862_v51  ;;  %v1861_v53 = vadd.f32 %v1859_v52, %v1785_v40 }
 0x58b   : > { %v1863_v54 = vmul.f32 %v2764_v20, %v1861_v53 }
 0x58d   : > { %1866 = vst.msk [vmem:[%s2917_s26 + $0x8] sm:$0xff] %vm1864_vm5, %v1863_v54 }
 0x58e PF: > { %s34_s27 = sadd.s32 1, %s2521_s27  }
 0x58f   : > { %p31_p2 = scmp.ge.s32.totalorder %s34_s27, 4  }
 0x591   :  { %33 = sbr.rel (!%p31_p2) target bundleno = 17 (0x11), region = 150 }
 0x596   :  { %1894 = vsyncpa [#allocation6], 1 }
 0x597   :  { %1896 = vsyncpa [#allocation6 + $0x1], 1 }
 0x598   :  { %1897 = vsyncpa [#allocation8], 1 }
 0x599   :  { %1898 = vsyncpa [#allocation11], 1 }

</bundles_post_ra>
